<compile_context>
chip_gen: v6e
topology: v6e:2x2x1
jax: 0.10.0
libtpu: 0.0.40
codegen_flags: <defaults>
</compile_context>

<pallas_src>
import math

import jax
import jax.numpy as jnp
from jax.experimental import pallas as pl
from jax.experimental.pallas import tpu as pltpu

# ----------------------------- model dims -----------------------------------
B = 2               # batch
C = 3               # image channels (NCHW)
IMG = 16            # image H = W
PATCH = 8           # patch size -> 2x2 = 4 vision tokens / image
NV = (IMG // PATCH) ** 2
ST = 8              # text sequence length
S = NV + ST         # semantic sequence length (12)
S_PAD = 16          # sublane-aligned padded sequence length
D = 128             # hidden size
H = 4               # attention heads
DH = D // H         # head dim (32)
F = 256             # MLP intermediate (SwiGLU)
V = 256             # vocab size
PATCH_DIM = C * PATCH * PATCH   # 192
EPS = 1e-6
NEG_INF = -1e9
M_TOT = B * S_PAD   # folded M dimension (32)


# ----------------------------- fused kernel ----------------------------------
def _fused_forward_kernel(
    patches_ref, txt_ref, vismask_ref, bias_ref, headmask_ref,   # activations / masks
    patch_w_ref, patch_b_ref,                                    # vision patch embed
    ln1_ref, wqkv_ref, bqkv_ref, wo_ref, bo_ref,                 # attention block
    ln2_ref, wgu_ref, wd_ref,                                    # SwiGLU MLP (gate|up fused)
    lnf_ref, lm_w_ref, lm_b_ref,                                 # final norm + LM head
    logits_ref,                                                  # output (M_TOT, V) f32
):
    f32 = jnp.float32
    bf16 = jnp.bfloat16
    m_tot = logits_ref.shape[0]

    # ---- vision patch embed + token merge (rows: [vision | text | pad] x B) ----
    vis = jnp.dot(patches_ref[...], patch_w_ref[...], preferred_element_type=f32)
    vis = (vis + patch_b_ref[...].astype(f32)) * vismask_ref[...]
    x = vis + txt_ref[...].astype(f32)                 # residual stream (M_TOT, D) f32

    def rmsnorm(vec, w_ref):
        var = jnp.mean(vec * vec, axis=-1, keepdims=True)
        return (vec * jax.lax.rsqrt(var + EPS) * w_ref[...].astype(f32)).astype(bf16)

    # ---- self-attention: fused QKV, heads packed block-diagonally ----
    h = rmsnorm(x, ln1_ref)                            # (M_TOT, D) bf16
    qkv = jnp.dot(h, wqkv_ref[...], preferred_element_type=f32)
    qkv = qkv + bqkv_ref[...].astype(f32)              # (M_TOT, 3D) f32
    q = qkv[:, 0 * D:1 * D]
    k = qkv[:, 1 * D:2 * D]
    v = qkv[:, 2 * D:3 * D]

    # Block-diagonal spreads: row block h holds K/V with only head-h columns live.
    hm = headmask_ref[...]                             # (H*M_TOT, D) f32 {0,1}
    k_bd = (jnp.concatenate([k] * H, axis=0) * hm).astype(bf16)   # (H*M_TOT, D)
    v_bd = (jnp.concatenate([v] * H, axis=0) * hm).astype(bf16)   # (H*M_TOT, D)

    # All-head scores in one matmul: (M_TOT, D) x (H*M_TOT, D)^T -> (M_TOT, H*M_TOT)
    dn = (((1,), (1,)), ((), ()))
    s = jax.lax.dot_general(q.astype(bf16), k_bd, dn, preferred_element_type=f32)
    s = s * (1.0 / math.sqrt(DH)) + bias_ref[...]      # bias already tiled per head

    # Segmented softmax: global row max is a valid stabilizer (shift-invariant).
    m = jnp.max(s, axis=-1, keepdims=True)
    p = jnp.exp(s - m)                                 # (M_TOT, H*M_TOT) f32

    # Per-head denominators (f32), broadcast across each head's DH output lanes.
    denom_cols = []
    for hh in range(H):
        d_h = jnp.sum(p[:, hh * m_tot:(hh + 1) * m_tot], axis=-1, keepdims=True)
        denom_cols.append(jnp.broadcast_to(d_h, (m_tot, DH)))
    inv = pl.reciprocal(jnp.concatenate(denom_cols, axis=1), approx=True)  # (M_TOT, D)

    # All-head PV in one matmul, heads land merged in (M_TOT, D); normalize after.
    pv = jnp.dot(p.astype(bf16), v_bd, preferred_element_type=f32)
    attn = pv * inv
    attn_out = jnp.dot(attn.astype(bf16), wo_ref[...], preferred_element_type=f32)
    x = x + attn_out + bo_ref[...].astype(f32)

    # ---- SwiGLU MLP (fused gate|up weight, one wide MXU matmul) ----
    h2 = rmsnorm(x, ln2_ref)
    gu = jnp.dot(h2, wgu_ref[...], preferred_element_type=f32)    # (M_TOT, 2F)
    g, u = gu[:, :F], gu[:, F:]
    hmlp = (g * jax.lax.logistic(g) * u).astype(bf16)             # silu(g) * u
    x = x + jnp.dot(hmlp, wd_ref[...], preferred_element_type=f32)

    # ---- final norm + LM head (lane-dense (M_TOT, V) f32 output) ----
    hf = rmsnorm(x, lnf_ref)
    logits = jnp.dot(hf, lm_w_ref[...], preferred_element_type=f32)
    logits_ref[...] = logits + lm_b_ref[...].astype(f32)


def fused_forward(patches, txt, vis_mask, bias_packed, head_mask, params):
    """Whole decoder forward in ONE pallas_call; batch folded into the M dim."""
    m_tot = patches.shape[0]

    weights = (
        params["patch_w"], params["patch_b"],
        params["ln1_w"], params["wqkv"], params["bqkv"],
        params["wo"], params["bo"],
        params["ln2_w"], params["wgu"], params["wd"],
        params["lnf_w"], params["lm_w"], params["lm_b"],
    )
    operands = (patches, txt, vis_mask, bias_packed, head_mask) + weights

    def full(a):
        # Whole-array VMEM-resident block (all operands are 2D and tiny here).
        return pl.BlockSpec(a.shape, lambda i: (0, 0))

    return pl.pallas_call(
        _fused_forward_kernel,
        out_shape=jax.ShapeDtypeStruct((m_tot, V), jnp.float32),
        grid=(1,),
        in_specs=[full(a) for a in operands],
        out_specs=pl.BlockSpec((m_tot, V), lambda i: (0, 0)),
        compiler_params=pltpu.CompilerParams(
            dimension_semantics=("arbitrary",),
        ),
    )(*operands)


# ----------------------------- parameter init --------------------------------
def init_params(key):
    ks = jax.random.split(key, 8)

    def nrm(k, shape, scale=0.02):
        return (jax.random.normal(k, shape, jnp.float32) * scale).astype(jnp.bfloat16)

    return {
        "patch_w": nrm(ks[0], (PATCH_DIM, D)),
        "patch_b": jnp.zeros((1, D), jnp.bfloat16),
        "tok_emb": nrm(ks[1], (V, D)),
        "ln1_w": jnp.ones((1, D), jnp.bfloat16),
        "ln2_w": jnp.ones((1, D), jnp.bfloat16),
        "lnf_w": jnp.ones((1, D), jnp.bfloat16),
        "wqkv": nrm(ks[2], (D, 3 * D)),
        "bqkv": nrm(ks[3], (1, 3 * D)),
        "wo": nrm(ks[4], (D, D)),
        "bo": jnp.zeros((1, D), jnp.bfloat16),
        "wgu": nrm(ks[5], (D, 2 * F)),        # gate|up fused: one wide matmul
        "wd": nrm(ks[6], (F, D)),
        "lm_w": nrm(ks[7], (D, V)),
        "lm_b": jnp.zeros((1, V), jnp.bfloat16),
    }


# ----------------------------- forward pass ----------------------------------
def pitvqa_gen_forward(params, image, qa_inputs_ids, qa_att_mask):
    """Mirrors PitVQAGen.forward(image, qa_inputs_ids, qa_att_mask) (tensor branch).

    image:          (B, C, 16, 16) NCHW float (or (C,16,16); unsqueezed like torch)
    qa_inputs_ids:  (B, ST) int32 token ids
    qa_att_mask:    (B, ST) {0,1} attention mask
    returns logits: (B, NV + ST, V) float32
    """
    if image.ndim == 3:                       # image.unsqueeze(0)
        image = image[None]
    image = image.astype(jnp.bfloat16)
    Bx = image.shape[0]
    m_tot = Bx * S_PAD

    # --- im2col for Conv2d(k=stride=PATCH): pure layout glue, stays in XLA ---
    nh = nw = IMG // PATCH
    patches = image.reshape(Bx, C, nh, PATCH, nw, PATCH)
    patches = patches.transpose(0, 2, 4, 1, 3, 5).reshape(Bx, NV, PATCH_DIM)
    patches = jnp.pad(patches, ((0, 0), (0, S_PAD - NV), (0, 0)))
    patches = patches.reshape(m_tot, PATCH_DIM)                    # (B*S_PAD, 192)

    # --- text token embedding gather (glue), placed at rows [NV, NV+ST) ---
    txt = jnp.take(params["tok_emb"], qa_inputs_ids, axis=0)       # (B, ST, D)
    txt = jnp.pad(txt, ((0, 0), (NV, S_PAD - S), (0, 0)))
    txt = txt.reshape(m_tot, D)                                    # (B*S_PAD, D)

    # --- vision-row mask: 1 on vision rows, 0 on text/pad rows ---
    pos_in_seq = jnp.arange(m_tot) % S_PAD
    vis_mask = (pos_in_seq < NV).astype(jnp.float32).reshape(m_tot, 1)

    # --- key validity: vision valid, text per mask, pad invalid ---
    key_valid = jnp.concatenate(
        [jnp.ones((Bx, NV), jnp.float32),
         qa_att_mask.astype(jnp.float32),
         jnp.zeros((Bx, S_PAD - S), jnp.float32)], axis=1).reshape(m_tot)

    # --- additive attention bias, precomputed once in the wrapper:
    #     block-diagonal over batch + causal + key padding, tiled per head ---
    ridx = jnp.arange(m_tot)
    qb, qi = ridx // S_PAD, ridx % S_PAD
    same_batch = qb[:, None] == qb[None, :]
    causal = qi[None, :] <= qi[:, None]
    allow = same_batch & causal & (key_valid[None, :] > 0.5)
    bias = jnp.where(allow, 0.0, NEG_INF).astype(jnp.float32)      # (m_tot, m_tot)
    bias_packed = jnp.tile(bias, (1, H))                           # (m_tot, H*m_tot)

    # --- head block-diagonal mask used to build K_bd / V_bd in the kernel ---
    rowh = jnp.arange(H * m_tot) // m_tot
    colh = jnp.arange(D) // DH
    head_mask = (rowh[:, None] == colh[None, :]).astype(jnp.float32)   # (H*m_tot, D)

    logits = fused_forward(patches.astype(jnp.bfloat16),
                           txt.astype(jnp.bfloat16),
                           vis_mask, bias_packed, head_mask, params)   # (m_tot, V)
    return logits.reshape(Bx, S_PAD, V)[:, :S, :]                      # (B, S, V)


# ----------------------------- main -------------------------------------------
if __name__ == "__main__":
    key = jax.random.PRNGKey(0)
    k_img, k_ids, k_par = jax.random.split(key, 3)

    params = init_params(k_par)

    image = jax.random.normal(k_img, (B, C, IMG, IMG), jnp.float32)    # NCHW
    qa_inputs_ids = jax.random.randint(k_ids, (B, ST), 0, V, jnp.int32)
    qa_att_mask = jnp.ones((B, ST), jnp.int32)
    qa_att_mask = qa_att_mask.at[1, ST - 2:].set(0)                    # exercise padding

    fwd = jax.jit(pitvqa_gen_forward)
    logits = fwd(params, image, qa_inputs_ids, qa_att_mask)
    jax.block_until_ready(logits)

    assert logits.shape == (B, S, V), logits.shape
    assert bool(jnp.all(jnp.isfinite(logits)))
    print("KERNEL_OK")
</pallas_src>

<mosaic_0001>
module attributes {stable_mosaic.version = 11 : i64} {
  func.func @_fused_forward_kernel(%arg0: i32, %arg1: memref<32x192xbf16, #tpu.memory_space<vmem>>, %arg2: memref<32x128xbf16, #tpu.memory_space<vmem>>, %arg3: memref<32x1xf32, #tpu.memory_space<vmem>>, %arg4: memref<32x128xf32, #tpu.memory_space<vmem>>, %arg5: memref<128x128xf32, #tpu.memory_space<vmem>>, %arg6: memref<192x128xbf16, #tpu.memory_space<vmem>>, %arg7: memref<1x128xbf16, #tpu.memory_space<vmem>>, %arg8: memref<1x128xbf16, #tpu.memory_space<vmem>>, %arg9: memref<128x384xbf16, #tpu.memory_space<vmem>>, %arg10: memref<1x384xbf16, #tpu.memory_space<vmem>>, %arg11: memref<128x128xbf16, #tpu.memory_space<vmem>>, %arg12: memref<1x128xbf16, #tpu.memory_space<vmem>>, %arg13: memref<1x128xbf16, #tpu.memory_space<vmem>>, %arg14: memref<128x512xbf16, #tpu.memory_space<vmem>>, %arg15: memref<256x128xbf16, #tpu.memory_space<vmem>>, %arg16: memref<1x128xbf16, #tpu.memory_space<vmem>>, %arg17: memref<128x256xbf16, #tpu.memory_space<vmem>>, %arg18: memref<1x256xbf16, #tpu.memory_space<vmem>>, %arg19: memref<32x256xf32, #tpu.memory_space<vmem>>) attributes {dimension_semantics = [#tpu.dimension_semantics<arbitrary>], iteration_bounds = array<i64: 1>, scalar_prefetch = 0 : i64, scratch_operands = 0 : i64, tpu.core_type = #tpu.core_type<tc>, window_params = [{pipeline_mode = #tpu.pipeline_mode<synchronous>, transform_indices = @transform_0, window_bounds = array<i64: 32, 192>}, {pipeline_mode = #tpu.pipeline_mode<synchronous>, transform_indices = @transform_1, window_bounds = array<i64: 32, 128>}, {pipeline_mode = #tpu.pipeline_mode<synchronous>, transform_indices = @transform_2, window_bounds = array<i64: 32, 1>}, {pipeline_mode = #tpu.pipeline_mode<synchronous>, transform_indices = @transform_3, window_bounds = array<i64: 32, 128>}, {pipeline_mode = #tpu.pipeline_mode<synchronous>, transform_indices = @transform_4, window_bounds = array<i64: 128, 128>}, {pipeline_mode = #tpu.pipeline_mode<synchronous>, transform_indices = @transform_5, window_bounds = array<i64: 192, 128>}, {pipeline_mode = #tpu.pipeline_mode<synchronous>, transform_indices = @transform_6, window_bounds = array<i64: 1, 128>}, {pipeline_mode = #tpu.pipeline_mode<synchronous>, transform_indices = @transform_7, window_bounds = array<i64: 1, 128>}, {pipeline_mode = #tpu.pipeline_mode<synchronous>, transform_indices = @transform_8, window_bounds = array<i64: 128, 384>}, {pipeline_mode = #tpu.pipeline_mode<synchronous>, transform_indices = @transform_9, window_bounds = array<i64: 1, 384>}, {pipeline_mode = #tpu.pipeline_mode<synchronous>, transform_indices = @transform_10, window_bounds = array<i64: 128, 128>}, {pipeline_mode = #tpu.pipeline_mode<synchronous>, transform_indices = @transform_11, window_bounds = array<i64: 1, 128>}, {pipeline_mode = #tpu.pipeline_mode<synchronous>, transform_indices = @transform_12, window_bounds = array<i64: 1, 128>}, {pipeline_mode = #tpu.pipeline_mode<synchronous>, transform_indices = @transform_13, window_bounds = array<i64: 128, 512>}, {pipeline_mode = #tpu.pipeline_mode<synchronous>, transform_indices = @transform_14, window_bounds = array<i64: 256, 128>}, {pipeline_mode = #tpu.pipeline_mode<synchronous>, transform_indices = @transform_15, window_bounds = array<i64: 1, 128>}, {pipeline_mode = #tpu.pipeline_mode<synchronous>, transform_indices = @transform_16, window_bounds = array<i64: 128, 256>}, {pipeline_mode = #tpu.pipeline_mode<synchronous>, transform_indices = @transform_17, window_bounds = array<i64: 1, 256>}, {pipeline_mode = #tpu.pipeline_mode<synchronous>, transform_indices = @transform_18, window_bounds = array<i64: 32, 256>}]} {
    %c0 = arith.constant 0 : index
    %c0_0 = arith.constant 0 : index
    %0 = vector.load %arg1[%c0, %c0_0] : memref<32x192xbf16, #tpu.memory_space<vmem>>, vector<32x192xbf16>
    %c0_1 = arith.constant 0 : index
    %c0_2 = arith.constant 0 : index
    %1 = vector.load %arg6[%c0_1, %c0_2] : memref<192x128xbf16, #tpu.memory_space<vmem>>, vector<192x128xbf16>
    %cst = arith.constant dense<0.000000e+00> : vector<32x128xf32>
    %2 = tpu.matmul %0, %1, %cst {dimension_numbers = #tpu.dot_dimension_numbers<[1], [0], [0], [1], [0, 0, 1, 1], [], []>} : vector<32x192xbf16>, vector<192x128xbf16>, vector<32x128xf32> -> vector<32x128xf32>
    %c0_3 = arith.constant 0 : index
    %c0_4 = arith.constant 0 : index
    %3 = vector.load %arg7[%c0_3, %c0_4] : memref<1x128xbf16, #tpu.memory_space<vmem>>, vector<1x128xbf16>
    %4 = arith.extf %3 : vector<1x128xbf16> to vector<1x128xf32>
    %5 = vector.broadcast %4 : vector<1x128xf32> to vector<32x128xf32>
    %6 = arith.addf %2, %5 : vector<32x128xf32>
    %c0_5 = arith.constant 0 : index
    %c0_6 = arith.constant 0 : index
    %7 = vector.load %arg3[%c0_5, %c0_6] : memref<32x1xf32, #tpu.memory_space<vmem>>, vector<32x1xf32>
    %8 = vector.broadcast %7 : vector<32x1xf32> to vector<32x128xf32>
    %9 = arith.mulf %6, %8 : vector<32x128xf32>
    %c0_7 = arith.constant 0 : index
    %c0_8 = arith.constant 0 : index
    %10 = vector.load %arg2[%c0_7, %c0_8] : memref<32x128xbf16, #tpu.memory_space<vmem>>, vector<32x128xbf16>
    %11 = arith.extf %10 : vector<32x128xbf16> to vector<32x128xf32>
    %12 = arith.addf %9, %11 : vector<32x128xf32>
    %13 = arith.mulf %12, %12 : vector<32x128xf32>
    %cst_9 = arith.constant dense<0.000000e+00> : vector<32xf32>
    %14 = vector.multi_reduction <add>, %13, %cst_9 [1] : vector<32x128xf32> to vector<32xf32>
    %15 = vector.shape_cast %14 : vector<32xf32> to vector<32x1xf32>
    %cst_10 = arith.constant 1.280000e+02 : f32
    %16 = vector.broadcast %cst_10 : f32 to vector<32x1xf32>
    %17 = arith.divf %15, %16 : vector<32x1xf32>
    %cst_11 = arith.constant 9.99999997E-7 : f32
    %18 = vector.broadcast %cst_11 : f32 to vector<32x1xf32>
    %19 = arith.addf %17, %18 : vector<32x1xf32>
    %20 = math.rsqrt %19 : vector<32x1xf32>
    %21 = vector.broadcast %20 : vector<32x1xf32> to vector<32x128xf32>
    %22 = arith.mulf %12, %21 : vector<32x128xf32>
    %c0_12 = arith.constant 0 : index
    %c0_13 = arith.constant 0 : index
    %23 = vector.load %arg8[%c0_12, %c0_13] : memref<1x128xbf16, #tpu.memory_space<vmem>>, vector<1x128xbf16>
    %24 = arith.extf %23 : vector<1x128xbf16> to vector<1x128xf32>
    %25 = vector.broadcast %24 : vector<1x128xf32> to vector<32x128xf32>
    %26 = arith.mulf %22, %25 : vector<32x128xf32>
    %27 = arith.truncf %26 : vector<32x128xf32> to vector<32x128xbf16>
    %c0_14 = arith.constant 0 : index
    %c0_15 = arith.constant 0 : index
    %28 = vector.load %arg9[%c0_14, %c0_15] : memref<128x384xbf16, #tpu.memory_space<vmem>>, vector<128x384xbf16>
    %cst_16 = arith.constant dense<0.000000e+00> : vector<32x384xf32>
    %29 = tpu.matmul %27, %28, %cst_16 {dimension_numbers = #tpu.dot_dimension_numbers<[1], [0], [0], [1], [0, 0, 1, 1], [], []>} : vector<32x128xbf16>, vector<128x384xbf16>, vector<32x384xf32> -> vector<32x384xf32>
    %c0_17 = arith.constant 0 : index
    %c0_18 = arith.constant 0 : index
    %30 = vector.load %arg10[%c0_17, %c0_18] : memref<1x384xbf16, #tpu.memory_space<vmem>>, vector<1x384xbf16>
    %31 = arith.extf %30 : vector<1x384xbf16> to vector<1x384xf32>
    %32 = vector.broadcast %31 : vector<1x384xf32> to vector<32x384xf32>
    %33 = arith.addf %29, %32 : vector<32x384xf32>
    %34 = vector.extract_strided_slice %33 {offsets = [0, 0], sizes = [32, 128], strides = [1, 1]} : vector<32x384xf32> to vector<32x128xf32>
    %35 = vector.extract_strided_slice %33 {offsets = [0, 128], sizes = [32, 128], strides = [1, 1]} : vector<32x384xf32> to vector<32x128xf32>
    %36 = vector.extract_strided_slice %33 {offsets = [0, 256], sizes = [32, 128], strides = [1, 1]} : vector<32x384xf32> to vector<32x128xf32>
    %c0_19 = arith.constant 0 : index
    %c0_20 = arith.constant 0 : index
    %37 = vector.load %arg5[%c0_19, %c0_20] : memref<128x128xf32, #tpu.memory_space<vmem>>, vector<128x128xf32>
    %38 = tpu.concatenate %35, %35, %35, %35 in 0 : vector<32x128xf32>, vector<32x128xf32>, vector<32x128xf32>, vector<32x128xf32> -> vector<128x128xf32>
    %39 = arith.mulf %38, %37 : vector<128x128xf32>
    %40 = arith.truncf %39 : vector<128x128xf32> to vector<128x128xbf16>
    %41 = tpu.concatenate %36, %36, %36, %36 in 0 : vector<32x128xf32>, vector<32x128xf32>, vector<32x128xf32>, vector<32x128xf32> -> vector<128x128xf32>
    %42 = arith.mulf %41, %37 : vector<128x128xf32>
    %43 = arith.truncf %42 : vector<128x128xf32> to vector<128x128xbf16>
    %44 = arith.truncf %34 : vector<32x128xf32> to vector<32x128xbf16>
    %cst_21 = arith.constant dense<0.000000e+00> : vector<32x128xf32>
    %45 = tpu.matmul %44, %40, %cst_21 {dimension_numbers = #tpu.dot_dimension_numbers<[1], [1], [0], [0], [0, 0, 1, 0], [], []>} : vector<32x128xbf16>, vector<128x128xbf16>, vector<32x128xf32> -> vector<32x128xf32>
    %cst_22 = arith.constant 0.176776692 : f32
    %46 = vector.broadcast %cst_22 : f32 to vector<32x128xf32>
    %47 = arith.mulf %45, %46 : vector<32x128xf32>
    %c0_23 = arith.constant 0 : index
    %c0_24 = arith.constant 0 : index
    %48 = vector.load %arg4[%c0_23, %c0_24] : memref<32x128xf32, #tpu.memory_space<vmem>>, vector<32x128xf32>
    %49 = arith.addf %47, %48 : vector<32x128xf32>
    %cst_25 = arith.constant dense<0xFF800000> : vector<32xf32>
    %50 = vector.multi_reduction <maximumf>, %49, %cst_25 [1] : vector<32x128xf32> to vector<32xf32>
    %51 = vector.shape_cast %50 : vector<32xf32> to vector<32x1xf32>
    %52 = vector.broadcast %51 : vector<32x1xf32> to vector<32x128xf32>
    %53 = arith.subf %49, %52 : vector<32x128xf32>
    %54 = math.exp %53 : vector<32x128xf32>
    %55 = vector.extract_strided_slice %54 {offsets = [0, 0], sizes = [32, 32], strides = [1, 1]} : vector<32x128xf32> to vector<32x32xf32>
    %cst_26 = arith.constant dense<0.000000e+00> : vector<32xf32>
    %56 = vector.multi_reduction <add>, %55, %cst_26 [1] : vector<32x32xf32> to vector<32xf32>
    %57 = vector.shape_cast %56 : vector<32xf32> to vector<32x1xf32>
    %58 = vector.shape_cast %57 : vector<32x1xf32> to vector<32x1xf32>
    %59 = vector.broadcast %58 : vector<32x1xf32> to vector<32x32xf32>
    %60 = vector.extract_strided_slice %54 {offsets = [0, 32], sizes = [32, 32], strides = [1, 1]} : vector<32x128xf32> to vector<32x32xf32>
    %cst_27 = arith.constant dense<0.000000e+00> : vector<32xf32>
    %61 = vector.multi_reduction <add>, %60, %cst_27 [1] : vector<32x32xf32> to vector<32xf32>
    %62 = vector.shape_cast %61 : vector<32xf32> to vector<32x1xf32>
    %63 = vector.shape_cast %62 : vector<32x1xf32> to vector<32x1xf32>
    %64 = vector.broadcast %63 : vector<32x1xf32> to vector<32x32xf32>
    %65 = vector.extract_strided_slice %54 {offsets = [0, 64], sizes = [32, 32], strides = [1, 1]} : vector<32x128xf32> to vector<32x32xf32>
    %cst_28 = arith.constant dense<0.000000e+00> : vector<32xf32>
    %66 = vector.multi_reduction <add>, %65, %cst_28 [1] : vector<32x32xf32> to vector<32xf32>
    %67 = vector.shape_cast %66 : vector<32xf32> to vector<32x1xf32>
    %68 = vector.shape_cast %67 : vector<32x1xf32> to vector<32x1xf32>
    %69 = vector.broadcast %68 : vector<32x1xf32> to vector<32x32xf32>
    %70 = vector.extract_strided_slice %54 {offsets = [0, 96], sizes = [32, 32], strides = [1, 1]} : vector<32x128xf32> to vector<32x32xf32>
    %cst_29 = arith.constant dense<0.000000e+00> : vector<32xf32>
    %71 = vector.multi_reduction <add>, %70, %cst_29 [1] : vector<32x32xf32> to vector<32xf32>
    %72 = vector.shape_cast %71 : vector<32xf32> to vector<32x1xf32>
    %73 = vector.shape_cast %72 : vector<32x1xf32> to vector<32x1xf32>
    %74 = vector.broadcast %73 : vector<32x1xf32> to vector<32x32xf32>
    %75 = tpu.concatenate %59, %64, %69, %74 in 1 : vector<32x32xf32>, vector<32x32xf32>, vector<32x32xf32>, vector<32x32xf32> -> vector<32x128xf32>
    %76 = tpu.reciprocal %75 {approx = true} : vector<32x128xf32> -> vector<32x128xf32>
    %77 = arith.truncf %54 : vector<32x128xf32> to vector<32x128xbf16>
    %cst_30 = arith.constant dense<0.000000e+00> : vector<32x128xf32>
    %78 = tpu.matmul %77, %43, %cst_30 {dimension_numbers = #tpu.dot_dimension_numbers<[1], [0], [0], [1], [0, 0, 1, 1], [], []>} : vector<32x128xbf16>, vector<128x128xbf16>, vector<32x128xf32> -> vector<32x128xf32>
    %79 = arith.mulf %78, %76 : vector<32x128xf32>
    %80 = arith.truncf %79 : vector<32x128xf32> to vector<32x128xbf16>
    %c0_31 = arith.constant 0 : index
    %c0_32 = arith.constant 0 : index
    %81 = vector.load %arg11[%c0_31, %c0_32] : memref<128x128xbf16, #tpu.memory_space<vmem>>, vector<128x128xbf16>
    %cst_33 = arith.constant dense<0.000000e+00> : vector<32x128xf32>
    %82 = tpu.matmul %80, %81, %cst_33 {dimension_numbers = #tpu.dot_dimension_numbers<[1], [0], [0], [1], [0, 0, 1, 1], [], []>} : vector<32x128xbf16>, vector<128x128xbf16>, vector<32x128xf32> -> vector<32x128xf32>
    %83 = arith.addf %12, %82 : vector<32x128xf32>
    %c0_34 = arith.constant 0 : index
    %c0_35 = arith.constant 0 : index
    %84 = vector.load %arg12[%c0_34, %c0_35] : memref<1x128xbf16, #tpu.memory_space<vmem>>, vector<1x128xbf16>
    %85 = arith.extf %84 : vector<1x128xbf16> to vector<1x128xf32>
    %86 = vector.broadcast %85 : vector<1x128xf32> to vector<32x128xf32>
    %87 = arith.addf %83, %86 : vector<32x128xf32>
    %88 = arith.mulf %87, %87 : vector<32x128xf32>
    %cst_36 = arith.constant dense<0.000000e+00> : vector<32xf32>
    %89 = vector.multi_reduction <add>, %88, %cst_36 [1] : vector<32x128xf32> to vector<32xf32>
    %90 = vector.shape_cast %89 : vector<32xf32> to vector<32x1xf32>
    %cst_37 = arith.constant 1.280000e+02 : f32
    %91 = vector.broadcast %cst_37 : f32 to vector<32x1xf32>
    %92 = arith.divf %90, %91 : vector<32x1xf32>
    %cst_38 = arith.constant 9.99999997E-7 : f32
    %93 = vector.broadcast %cst_38 : f32 to vector<32x1xf32>
    %94 = arith.addf %92, %93 : vector<32x1xf32>
    %95 = math.rsqrt %94 : vector<32x1xf32>
    %96 = vector.broadcast %95 : vector<32x1xf32> to vector<32x128xf32>
    %97 = arith.mulf %87, %96 : vector<32x128xf32>
    %c0_39 = arith.constant 0 : index
    %c0_40 = arith.constant 0 : index
    %98 = vector.load %arg13[%c0_39, %c0_40] : memref<1x128xbf16, #tpu.memory_space<vmem>>, vector<1x128xbf16>
    %99 = arith.extf %98 : vector<1x128xbf16> to vector<1x128xf32>
    %100 = vector.broadcast %99 : vector<1x128xf32> to vector<32x128xf32>
    %101 = arith.mulf %97, %100 : vector<32x128xf32>
    %102 = arith.truncf %101 : vector<32x128xf32> to vector<32x128xbf16>
    %c0_41 = arith.constant 0 : index
    %c0_42 = arith.constant 0 : index
    %103 = vector.load %arg14[%c0_41, %c0_42] : memref<128x512xbf16, #tpu.memory_space<vmem>>, vector<128x512xbf16>
    %cst_43 = arith.constant dense<0.000000e+00> : vector<32x512xf32>
    %104 = tpu.matmul %102, %103, %cst_43 {dimension_numbers = #tpu.dot_dimension_numbers<[1], [0], [0], [1], [0, 0, 1, 1], [], []>} : vector<32x128xbf16>, vector<128x512xbf16>, vector<32x512xf32> -> vector<32x512xf32>
    %105 = vector.extract_strided_slice %104 {offsets = [0, 0], sizes = [32, 256], strides = [1, 1]} : vector<32x512xf32> to vector<32x256xf32>
    %106 = vector.extract_strided_slice %104 {offsets = [0, 256], sizes = [32, 256], strides = [1, 1]} : vector<32x512xf32> to vector<32x256xf32>
    %107 = arith.negf %105 : vector<32x256xf32>
    %108 = math.exp %107 : vector<32x256xf32>
    %cst_44 = arith.constant 1.000000e+00 : f32
    %109 = vector.broadcast %cst_44 : f32 to vector<32x256xf32>
    %110 = arith.addf %109, %108 : vector<32x256xf32>
    %111 = arith.divf %109, %110 : vector<32x256xf32>
    %112 = arith.mulf %105, %111 : vector<32x256xf32>
    %113 = arith.mulf %112, %106 : vector<32x256xf32>
    %114 = arith.truncf %113 : vector<32x256xf32> to vector<32x256xbf16>
    %c0_45 = arith.constant 0 : index
    %c0_46 = arith.constant 0 : index
    %115 = vector.load %arg15[%c0_45, %c0_46] : memref<256x128xbf16, #tpu.memory_space<vmem>>, vector<256x128xbf16>
    %cst_47 = arith.constant dense<0.000000e+00> : vector<32x128xf32>
    %116 = tpu.matmul %114, %115, %cst_47 {dimension_numbers = #tpu.dot_dimension_numbers<[1], [0], [0], [1], [0, 0, 1, 1], [], []>} : vector<32x256xbf16>, vector<256x128xbf16>, vector<32x128xf32> -> vector<32x128xf32>
    %117 = arith.addf %87, %116 : vector<32x128xf32>
    %118 = arith.mulf %117, %117 : vector<32x128xf32>
    %cst_48 = arith.constant dense<0.000000e+00> : vector<32xf32>
    %119 = vector.multi_reduction <add>, %118, %cst_48 [1] : vector<32x128xf32> to vector<32xf32>
    %120 = vector.shape_cast %119 : vector<32xf32> to vector<32x1xf32>
    %cst_49 = arith.constant 1.280000e+02 : f32
    %121 = vector.broadcast %cst_49 : f32 to vector<32x1xf32>
    %122 = arith.divf %120, %121 : vector<32x1xf32>
    %cst_50 = arith.constant 9.99999997E-7 : f32
    %123 = vector.broadcast %cst_50 : f32 to vector<32x1xf32>
    %124 = arith.addf %122, %123 : vector<32x1xf32>
    %125 = math.rsqrt %124 : vector<32x1xf32>
    %126 = vector.broadcast %125 : vector<32x1xf32> to vector<32x128xf32>
    %127 = arith.mulf %117, %126 : vector<32x128xf32>
    %c0_51 = arith.constant 0 : index
    %c0_52 = arith.constant 0 : index
    %128 = vector.load %arg16[%c0_51, %c0_52] : memref<1x128xbf16, #tpu.memory_space<vmem>>, vector<1x128xbf16>
    %129 = arith.extf %128 : vector<1x128xbf16> to vector<1x128xf32>
    %130 = vector.broadcast %129 : vector<1x128xf32> to vector<32x128xf32>
    %131 = arith.mulf %127, %130 : vector<32x128xf32>
    %132 = arith.truncf %131 : vector<32x128xf32> to vector<32x128xbf16>
    %c0_53 = arith.constant 0 : index
    %c0_54 = arith.constant 0 : index
    %133 = vector.load %arg17[%c0_53, %c0_54] : memref<128x256xbf16, #tpu.memory_space<vmem>>, vector<128x256xbf16>
    %cst_55 = arith.constant dense<0.000000e+00> : vector<32x256xf32>
    %134 = tpu.matmul %132, %133, %cst_55 {dimension_numbers = #tpu.dot_dimension_numbers<[1], [0], [0], [1], [0, 0, 1, 1], [], []>} : vector<32x128xbf16>, vector<128x256xbf16>, vector<32x256xf32> -> vector<32x256xf32>
    %c0_56 = arith.constant 0 : index
    %c0_57 = arith.constant 0 : index
    %135 = vector.load %arg18[%c0_56, %c0_57] : memref<1x256xbf16, #tpu.memory_space<vmem>>, vector<1x256xbf16>
    %136 = arith.extf %135 : vector<1x256xbf16> to vector<1x256xf32>
    %137 = vector.broadcast %136 : vector<1x256xf32> to vector<32x256xf32>
    %138 = arith.addf %134, %137 : vector<32x256xf32>
    %c0_58 = arith.constant 0 : index
    %c0_59 = arith.constant 0 : index
    %139 = vector.load %arg19[%c0_58, %c0_59] : memref<32x256xf32, #tpu.memory_space<vmem>>, vector<32x256xf32>
    tpu.vector_store %arg19[%c0_58, %c0_59], %138 {strides = array<i32>} : memref<32x256xf32, #tpu.memory_space<vmem>>, vector<32x256xf32>,
    return
  }
  func.func @transform_0(%arg0: i32) -> (i32, i32) {
    %c0_i32 = arith.constant 0 : i32
    %c0_i32_0 = arith.constant 0 : i32
    %c0_i32_1 = arith.constant 0 : i32
    return %c0_i32, %c0_i32_0 : i32, i32
  }
  func.func @transform_1(%arg0: i32) -> (i32, i32) {
    %c0_i32 = arith.constant 0 : i32
    %c0_i32_0 = arith.constant 0 : i32
    %c0_i32_1 = arith.constant 0 : i32
    return %c0_i32, %c0_i32_0 : i32, i32
  }
  func.func @transform_2(%arg0: i32) -> (i32, i32) {
    %c0_i32 = arith.constant 0 : i32
    %c0_i32_0 = arith.constant 0 : i32
    %c0_i32_1 = arith.constant 0 : i32
    return %c0_i32, %c0_i32_0 : i32, i32
  }
  func.func @transform_3(%arg0: i32) -> (i32, i32) {
    %c0_i32 = arith.constant 0 : i32
    %c0_i32_0 = arith.constant 0 : i32
    %c0_i32_1 = arith.constant 0 : i32
    return %c0_i32, %c0_i32_0 : i32, i32
  }
  func.func @transform_4(%arg0: i32) -> (i32, i32) {
    %c0_i32 = arith.constant 0 : i32
    %c0_i32_0 = arith.constant 0 : i32
    %c0_i32_1 = arith.constant 0 : i32
    return %c0_i32, %c0_i32_0 : i32, i32
  }
  func.func @transform_5(%arg0: i32) -> (i32, i32) {
    %c0_i32 = arith.constant 0 : i32
    %c0_i32_0 = arith.constant 0 : i32
    %c0_i32_1 = arith.constant 0 : i32
    return %c0_i32, %c0_i32_0 : i32, i32
  }
  func.func @transform_6(%arg0: i32) -> (i32, i32) {
    %c0_i32 = arith.constant 0 : i32
    %c0_i32_0 = arith.constant 0 : i32
    %c0_i32_1 = arith.constant 0 : i32
    return %c0_i32, %c0_i32_0 : i32, i32
  }
  func.func @transform_7(%arg0: i32) -> (i32, i32) {
    %c0_i32 = arith.constant 0 : i32
    %c0_i32_0 = arith.constant 0 : i32
    %c0_i32_1 = arith.constant 0 : i32
    return %c0_i32, %c0_i32_0 : i32, i32
  }
  func.func @transform_8(%arg0: i32) -> (i32, i32) {
    %c0_i32 = arith.constant 0 : i32
    %c0_i32_0 = arith.constant 0 : i32
    %c0_i32_1 = arith.constant 0 : i32
    return %c0_i32, %c0_i32_0 : i32, i32
  }
  func.func @transform_9(%arg0: i32) -> (i32, i32) {
    %c0_i32 = arith.constant 0 : i32
    %c0_i32_0 = arith.constant 0 : i32
    %c0_i32_1 = arith.constant 0 : i32
    return %c0_i32, %c0_i32_0 : i32, i32
  }
  func.func @transform_10(%arg0: i32) -> (i32, i32) {
    %c0_i32 = arith.constant 0 : i32
    %c0_i32_0 = arith.constant 0 : i32
    %c0_i32_1 = arith.constant 0 : i32
    return %c0_i32, %c0_i32_0 : i32, i32
  }
  func.func @transform_11(%arg0: i32) -> (i32, i32) {
    %c0_i32 = arith.constant 0 : i32
    %c0_i32_0 = arith.constant 0 : i32
    %c0_i32_1 = arith.constant 0 : i32
    return %c0_i32, %c0_i32_0 : i32, i32
  }
  func.func @transform_12(%arg0: i32) -> (i32, i32) {
    %c0_i32 = arith.constant 0 : i32
    %c0_i32_0 = arith.constant 0 : i32
    %c0_i32_1 = arith.constant 0 : i32
    return %c0_i32, %c0_i32_0 : i32, i32
  }
  func.func @transform_13(%arg0: i32) -> (i32, i32) {
    %c0_i32 = arith.constant 0 : i32
    %c0_i32_0 = arith.constant 0 : i32
    %c0_i32_1 = arith.constant 0 : i32
    return %c0_i32, %c0_i32_0 : i32, i32
  }
  func.func @transform_14(%arg0: i32) -> (i32, i32) {
    %c0_i32 = arith.constant 0 : i32
    %c0_i32_0 = arith.constant 0 : i32
    %c0_i32_1 = arith.constant 0 : i32
    return %c0_i32, %c0_i32_0 : i32, i32
  }
  func.func @transform_15(%arg0: i32) -> (i32, i32) {
    %c0_i32 = arith.constant 0 : i32
    %c0_i32_0 = arith.constant 0 : i32
    %c0_i32_1 = arith.constant 0 : i32
    return %c0_i32, %c0_i32_0 : i32, i32
  }
  func.func @transform_16(%arg0: i32) -> (i32, i32) {
    %c0_i32 = arith.constant 0 : i32
    %c0_i32_0 = arith.constant 0 : i32
    %c0_i32_1 = arith.constant 0 : i32
    return %c0_i32, %c0_i32_0 : i32, i32
  }
  func.func @transform_17(%arg0: i32) -> (i32, i32) {
    %c0_i32 = arith.constant 0 : i32
    %c0_i32_0 = arith.constant 0 : i32
    %c0_i32_1 = arith.constant 0 : i32
    return %c0_i32, %c0_i32_0 : i32, i32
  }
  func.func @transform_18(%arg0: i32) -> (i32, i32) {
    %c0_i32 = arith.constant 0 : i32
    %c0_i32_0 = arith.constant 0 : i32
    %c0_i32_1 = arith.constant 0 : i32
    return %c0_i32, %c0_i32_0 : i32, i32
  }
}

</mosaic_0001>

<bundles_post_ra>
// kernel: tile.9
= control target key start
LH: loop header
LB: loop body
LE: loop exit
PB: predicated region body
PF: predicated region fallthrough
CT: control target
= control target key end

     0   :  { %vm163_vm0 = vcmask 1047556   ;;  %s399_s10 = smov 96   ;;  %vm165_vm1 = vcmask 261120   ;;  %s401_s21 = smov 32   ;;  %vm202_vm2 = vcmask 1048320   ;;  %vm245_vm3 = vcmask 785920   ;;  %s580_s0 = inlined_call_operand.vmem [shape: f32[32,4,32], index: 0, kind: input, shape index: {}]   ;;  %s581_s1 = inlined_call_operand.vmem [shape: f32[32,128], index: 1, kind: output, shape index: {}]  }
   0x1   :  { %v377_v0 = vld [vmem:[%s580_s0 + $0x1c] sm:$0xf]  ;;  %v378_v1 = vld [vmem:[%s580_s0 + $0x18] sm:$0xf]  ;;  %v379_v2 = vld [vmem:[%s580_s0 + $0x14] sm:$0xf] }
   0x2   :  { %129 = vst [vmem:[#allocation0 + $0x38] sm:$0xf] %v377_v0  ;;  %134 = vst [vmem:[#allocation0 + $0x30] sm:$0xf] %v378_v1  ;;  %v380_v3 = vld [vmem:[%s580_s0 + $0x10] sm:$0xf] }
   0x3   :  { %139 = vst [vmem:[#allocation0 + $0x28] sm:$0xf] %v379_v2  ;;  %v381_v4 = vld [vmem:[%s580_s0 + $0xc] sm:$0xf]  ;;  %v382_v5 = vld [vmem:[%s580_s0 + $0x8] sm:$0xf] }
   0x4   :  { %144 = vst [vmem:[#allocation0 + $0x20] sm:$0xf] %v380_v3  ;;  %149 = vst [vmem:[#allocation0 + $0x18] sm:$0xf] %v381_v4  ;;  %v383_v6 = vld [vmem:[%s580_s0 + $0x4] sm:$0xf] }
   0x5   :  { %154 = vst [vmem:[#allocation0 + $0x10] sm:$0xf] %v382_v5  ;;  %v159_v7 = vld [vmem:[%s580_s0] sm:$0xf]  ;;  %158 = vst [vmem:[#allocation0 + $0x8] sm:$0xf] %v383_v6 }
   0x6   :  { %160 = vst [vmem:[#allocation0] sm:$0xf] %v159_v7  ;;  %v361_v8 = vld [vmem:[%s580_s0 + $0x5c] sm:$0xf]  ;;  %v362_v9 = vld [vmem:[%s580_s0 + $0x58] sm:$0xf] }
   0x7   :  { %v363_v10 = vld [vmem:[%s580_s0 + $0x54] sm:$0xf]  ;;  %49 = vst [vmem:[#allocation0 + $0xb8] sm:$0xf] %v361_v8  ;;  %54 = vst [vmem:[#allocation0 + $0xb0] sm:$0xf] %v362_v9 }
   0x8   :  { %59 = vst [vmem:[#allocation0 + $0xa8] sm:$0xf] %v363_v10  ;;  %v364_v11 = vld [vmem:[%s580_s0 + $0x50] sm:$0xf]  ;;  %v365_v12 = vld [vmem:[%s580_s0 + $0x4c] sm:$0xf] }
   0x9   :  { %v366_v13 = vld [vmem:[%s580_s0 + $0x48] sm:$0xf]  ;;  %64 = vst [vmem:[#allocation0 + $0xa0] sm:$0xf] %v364_v11  ;;  %69 = vst [vmem:[#allocation0 + $0x98] sm:$0xf] %v365_v12 }
   0xa   :  { %74 = vst [vmem:[#allocation0 + $0x90] sm:$0xf] %v366_v13  ;;  %v367_v14 = vld [vmem:[%s580_s0 + $0x44] sm:$0xf]  ;;  %v368_v15 = vld [vmem:[%s580_s0 + $0x40] sm:$0xf] }
   0xb   :  { %v369_v16 = vld [vmem:[%s580_s0 + $0x3c] sm:$0xf]  ;;  %79 = vst [vmem:[#allocation0 + $0x88] sm:$0xf] %v367_v14  ;;  %84 = vst [vmem:[#allocation0 + $0x80] sm:$0xf] %v368_v15 }
   0xc   :  { %89 = vst [vmem:[#allocation0 + $0x78] sm:$0xf] %v369_v16  ;;  %v370_v17 = vld [vmem:[%s580_s0 + $0x38] sm:$0xf]  ;;  %v371_v18 = vld [vmem:[%s580_s0 + $0x34] sm:$0xf] }
   0xd   :  { %v372_v19 = vld [vmem:[%s580_s0 + $0x30] sm:$0xf]  ;;  %94 = vst [vmem:[#allocation0 + $0x70] sm:$0xf] %v370_v17  ;;  %99 = vst [vmem:[#allocation0 + $0x68] sm:$0xf] %v371_v18 }
   0xe   :  { %104 = vst [vmem:[#allocation0 + $0x60] sm:$0xf] %v372_v19  ;;  %v373_v20 = vld [vmem:[%s580_s0 + $0x2c] sm:$0xf]  ;;  %v374_v21 = vld [vmem:[%s580_s0 + $0x28] sm:$0xf] }
   0xf   :  { %v375_v22 = vld [vmem:[%s580_s0 + $0x24] sm:$0xf]  ;;  %109 = vst [vmem:[#allocation0 + $0x58] sm:$0xf] %v373_v20  ;;  %114 = vst [vmem:[#allocation0 + $0x50] sm:$0xf] %v374_v21 }
  0x10   :  { %119 = vst [vmem:[#allocation0 + $0x48] sm:$0xf] %v375_v22  ;;  %v376_v23 = vld [vmem:[%s580_s0 + $0x20] sm:$0xf]  ;;  %v353_v24 = vld [vmem:[%s580_s0 + $0x7c] sm:$0xf] }
  0x11   :  { %v354_v25 = vld [vmem:[%s580_s0 + $0x78] sm:$0xf]  ;;  %124 = vst [vmem:[#allocation0 + $0x40] sm:$0xf] %v376_v23  ;;  %9 = vst [vmem:[#allocation0 + $0xf8] sm:$0xf] %v353_v24 }
  0x12   :  { %v197_v26 = vld [vmem:[#allocation0 + $0x3] ss:$8 sm:$0xf0]   ;;  %14 = vst [vmem:[#allocation0 + $0xf0] sm:$0xf] %v354_v25  ;;  %vm288_vm4 = vcmask 523520  }
  0x13   :  { %v355_v27 = vld [vmem:[%s580_s0 + $0x74] sm:$0xf]  ;;  %v195_v28 = vld [vmem:[#allocation0 + $0x3] ss:$8 sm:$0xf]  }
  0x14   :  { %19 = vst [vmem:[#allocation0 + $0xe8] sm:$0xf] %v355_v27  ;;  %v356_v29 = vld [vmem:[%s580_s0 + $0x70] sm:$0xf]  ;;  %v199_v30 = vsel %vm163_vm0, %v197_v26, %v195_v28  ;;  %v357_v31 = vld [vmem:[%s580_s0 + $0x6c] sm:$0xf] }
  0x15   :  { %24 = vst [vmem:[#allocation0 + $0xe0] sm:$0xf] %v356_v29  ;;  %v358_v32 = vld [vmem:[%s580_s0 + $0x68] sm:$0xf]  ;;  %v359_v33 = vld [vmem:[%s580_s0 + $0x64] sm:$0xf]  ;;  %200 = vrot.lane.b32.xlu0 %v199_v30, %s399_s10 }
  0x16   :  { %v218_v34 = vld [vmem:[#allocation0 + $0x83] ss:$8 sm:$0xf0]   ;;  %29 = vst [vmem:[#allocation0 + $0xd8] sm:$0xf] %v357_v31 }
  0x17   :  { %34 = vst [vmem:[#allocation0 + $0xd0] sm:$0xf] %v358_v32  ;;  %39 = vst [vmem:[#allocation0 + $0xc8] sm:$0xf] %v359_v33  ;;  %v360_v35 = vld [vmem:[%s580_s0 + $0x60] sm:$0xf] }
  0x18   :  { %v216_v36 = vld [vmem:[#allocation0 + $0x83] ss:$8 sm:$0xf]   ;;  %44 = vst [vmem:[#allocation0 + $0xc0] sm:$0xf] %v360_v35  ;;  %s400_s0 = smov 64  }
  0x19   :  { %v220_v37 = vsel %vm163_vm0, %v218_v34, %v216_v36  ;;  %v207_v38 = vld [vmem:[#allocation0 + $0x43] ss:$8 sm:$0xf0]   ;;  %v238_v39 = vld [vmem:[#allocation0 + $0x2] ss:$8 sm:$0xf]  }
  0x1a   :  { %221 = vrot.lane.b32.xlu1 %v220_v37, %s399_s10  ;;  %v205_v40 = vld [vmem:[#allocation0 + $0x43] ss:$8 sm:$0xf]   ;;  %v240_v41 = vld [vmem:[#allocation0 + $0x2] ss:$8 sm:$0xf0]  }
  0x1b   :  { %v209_v42 = vsel %vm163_vm0, %v207_v38, %v205_v40  ;;  %v250_v44 = vld [vmem:[#allocation0 + $0x42] ss:$8 sm:$0xf0]   ;;  %v242_v45 = vsel %vm163_vm0, %v240_v41, %v238_v39  ;;  %v281_v52 = vld [vmem:[#allocation0 + $0x1] ss:$8 sm:$0xf]  }
  0x1c   :  { %210 = vrot.lane.b32.xlu0 %v209_v42, %s399_s10  ;;  %v229_v43 = vld [vmem:[#allocation0 + $0xc3] ss:$8 sm:$0xf0]   ;;  %v248_v46 = vld [vmem:[#allocation0 + $0x42] ss:$8 sm:$0xf]  }
  0x1d   :  { %v259_v47 = vld [vmem:[#allocation0 + $0x82] ss:$8 sm:$0xf]   ;;  %v252_v53 = vsel %vm163_vm0, %v250_v44, %v248_v46  ;;  %v283_v55 = vld [vmem:[#allocation0 + $0x1] ss:$8 sm:$0xf0]  }
  0x1e   :  { %v261_v49 = vld [vmem:[#allocation0 + $0x82] ss:$8 sm:$0xf0]   ;;  %v161_v56 = vld [vmem:[#allocation0] ss:$8 sm:$0xf]   ;;  %v285_v4 = vsel %vm163_vm0, %v283_v55, %v281_v52 }
  0x1f   :  { %v227_v48 = vld [vmem:[#allocation0 + $0xc3] ss:$8 sm:$0xf]   ;;  %v272_v51 = vld [vmem:[#allocation0 + $0xc2] ss:$8 sm:$0xf0]   ;;  %v263_v54 = vsel %vm163_vm0, %v261_v49, %v259_v47 }
  0x20   :  { %v231_v50 = vsel %vm163_vm0, %v229_v43, %v227_v48  ;;  %243 = vrot.lane.b32.xlu0 %v242_v45, %s400_s0  ;;  %v270_v57 = vld [vmem:[#allocation0 + $0xc2] ss:$8 sm:$0xf]   ;;  %v162_v58 = vld [vmem:[#allocation0] ss:$8 sm:$0xf0]  }
  0x21   :  { %232 = vrot.lane.b32.xlu1 %v231_v50, %s399_s10  ;;  %v164_v59 = vsel %vm163_vm0, %v162_v58, %v161_v56  ;;  %v177_v60 = vld [vmem:[#allocation0 + $0x80] ss:$8 sm:$0xf]   ;;  %v291_v62 = vld [vmem:[#allocation0 + $0x41] ss:$8 sm:$0xf]   ;;  %v274_v3 = vsel %vm163_vm0, %v272_v51, %v270_v57 }
  0x22   :  { %v179_v61 = vld [vmem:[#allocation0 + $0x80] ss:$8 sm:$0xf0]   ;;  %v293_v63 = vld [vmem:[#allocation0 + $0x41] ss:$8 sm:$0xf0]  }
  0x23   :  { %166 = vst.msk [vmem:[%s581_s1] sm:$0xff] %vm165_vm1, %v164_v59   ;;  %v181_v0 = vsel %vm163_vm0, %v179_v61, %v177_v60  ;;  %v168_v1 = vld [vmem:[#allocation0 + $0x40] ss:$8 sm:$0xf]   ;;  %v295_v11 = vsel %vm163_vm0, %v293_v63, %v291_v62 }
  0x24   :  { %264 = vrot.lane.b32.xlu0 %v263_v54, %s400_s0  ;;  %v170_v2 = vld [vmem:[#allocation0 + $0x40] ss:$8 sm:$0xf0]   ;;  %385 = vst.msk [vmem:[%s581_s1 + $0x10] sm:$0xff] %vm165_vm1, %v181_v0  }
  0x25   :  { %253 = vrot.lane.b32.xlu1 %v252_v53, %s400_s0  ;;  %v172_v5 = vsel %vm163_vm0, %v170_v2, %v168_v1  ;;  %v186_v6 = vld [vmem:[#allocation0 + $0xc0] ss:$8 sm:$0xf]   ;;  %v302_v8 = vld [vmem:[#allocation0 + $0x81] ss:$8 sm:$0xf]  }
  0x26   :  { %v188_v7 = vld [vmem:[#allocation0 + $0xc0] ss:$8 sm:$0xf0]   ;;  %v304_v9 = vld [vmem:[#allocation0 + $0x81] ss:$8 sm:$0xf0]  }
  0x27   :  { %384 = vst.msk [vmem:[%s581_s1 + $0x8] sm:$0xff] %vm165_vm1, %v172_v5   ;;  %v190_v10 = vsel %vm163_vm0, %v188_v7, %v186_v6  ;;  %v306_v12 = vsel %vm163_vm0, %v304_v9, %v302_v8  ;;  %v313_v13 = vld [vmem:[#allocation0 + $0xc1] ss:$8 sm:$0xf]  }
  0x28   :  { %386 = vst.msk [vmem:[%s581_s1 + $0x18] sm:$0xff] %vm165_vm1, %v190_v10   ;;  %286 = vrot.lane.b32.xlu0 %v285_v4, %s401_s21  ;;  %v315_v14 = vld [vmem:[#allocation0 + $0xc1] ss:$8 sm:$0xf0]  }
  0x29   :  { %275 = vrot.lane.b32.xlu1 %v274_v3, %s400_s0  ;;  %v317_v15 = vsel %vm163_vm0, %v315_v14, %v313_v13 }
  0x2c   :  { %307 = vrot.lane.b32.xlu0 %v306_v12, %s401_s21 }
  0x2d   :  { %296 = vrot.lane.b32.xlu1 %v295_v11, %s401_s21 }
  0x31   :  { %318 = vrot.lane.b32.xlu1 %v317_v15, %s401_s21 }
  0x87   :  { %v201_v16 = vpop.permute.xlu0 %200  }
  0x88   :  { %203 = vst.msk [vmem:[%s581_s1] sm:$0xff] %vm202_vm2, %v201_v16  }
  0x8c   :  { %v222_v17 = vpop.permute.xlu1 %221  }
  0x8d   :  { %388 = vst.msk [vmem:[%s581_s1 + $0x10] sm:$0xff] %vm202_vm2, %v222_v17  }
  0x8e   :  { %v211_v18 = vpop.permute.xlu0 %210  }
  0x8f   :  { %387 = vst.msk [vmem:[%s581_s1 + $0x8] sm:$0xff] %vm202_vm2, %v211_v18  }
  0x92   :  { %v244_v20 = vpop.permute.xlu0 %243  }
  0x93   :  { %v233_v19 = vpop.permute.xlu1 %232   ;;  %246 = vst.msk [vmem:[%s581_s1] sm:$0xff] %vm245_vm3, %v244_v20  }
  0x94   :  { %389 = vst.msk [vmem:[%s581_s1 + $0x18] sm:$0xff] %vm202_vm2, %v233_v19  }
  0x96   :  { %v265_v22 = vpop.permute.xlu0 %264  }
  0x97   :  { %v254_v21 = vpop.permute.xlu1 %253   ;;  %391 = vst.msk [vmem:[%s581_s1 + $0x10] sm:$0xff] %vm245_vm3, %v265_v22  }
  0x98   :  { %390 = vst.msk [vmem:[%s581_s1 + $0x8] sm:$0xff] %vm245_vm3, %v254_v21  }
  0x9a   :  { %v287_v24 = vpop.permute.xlu0 %286  }
  0x9b   :  { %v276_v23 = vpop.permute.xlu1 %275   ;;  %289 = vst.msk [vmem:[%s581_s1] sm:$0xff] %vm288_vm4, %v287_v24  }
  0x9c   :  { %392 = vst.msk [vmem:[%s581_s1 + $0x18] sm:$0xff] %vm245_vm3, %v276_v23  }
  0x9e   :  { %v308_v26 = vpop.permute.xlu0 %307  }
  0x9f   :  { %v297_v25 = vpop.permute.xlu1 %296   ;;  %394 = vst.msk [vmem:[%s581_s1 + $0x10] sm:$0xff] %vm288_vm4, %v308_v26  }
  0xa0   :  { %393 = vst.msk [vmem:[%s581_s1 + $0x8] sm:$0xff] %vm288_vm4, %v297_v25  }
  0xa3   :  { %v319_v27 = vpop.permute.xlu1 %318  }
  0xa4   :  { %395 = vst.msk [vmem:[%s581_s1 + $0x18] sm:$0xff] %vm288_vm4, %v319_v27  }

// kernel: pitvqa_gen_forward.1
= control target key start
LH: loop header
LB: loop body
LE: loop exit
PB: predicated region body
PF: predicated region fallthrough
CT: control target
= control target key end

     0   :  { %v2362_v0 = vmov 0   ;;  %vm184_vm0 = vcmask 523264   ;;  %v90_v24 = vlaneseq  ;;  %s2364_s20 = smov 64   ;;  %vm760_vm1 = vcmask 261120   ;;  %s3106_s5 = inlined_call_operand.vmem [shape: bf16[192,128], index: 5, kind: input, shape index: {}]   ;;  %s3107_s0 = inlined_call_operand.vmem [shape: bf16[32,192], index: 0, kind: input, shape index: {}]   ;;  %s3108_s2 = inlined_call_operand.vmem [shape: f32[32,1], index: 2, kind: input, shape index: {}]   ;;  %s3109_s8 = inlined_call_operand.vmem [shape: bf16[128,384], index: 8, kind: input, shape index: {}]   ;;  %s3110_s6 = inlined_call_operand.vmem [shape: bf16[1,128], index: 6, kind: input, shape index: {}]   ;;  %s3111_s1 = inlined_call_operand.vmem [shape: bf16[32,128], index: 1, kind: input, shape index: {}]   ;;  %s3112_s7 = inlined_call_operand.vmem [shape: bf16[1,128], index: 7, kind: input, shape index: {}]   ;;  %s3113_s9 = inlined_call_operand.vmem [shape: bf16[1,384], index: 9, kind: input, shape index: {}]   ;;  %s3114_s4 = inlined_call_operand.vmem [shape: f32[128,128], index: 4, kind: input, shape index: {}]   ;;  %s3115_s3 = inlined_call_operand.vmem [shape: f32[32,128], index: 3, kind: input, shape index: {}]   ;;  %s3116_s10 = inlined_call_operand.vmem [shape: bf16[128,128], index: 10, kind: input, shape index: {}]   ;;  %s3117_s13 = inlined_call_operand.vmem [shape: bf16[128,512], index: 13, kind: input, shape index: {}]   ;;  %s3118_s11 = inlined_call_operand.vmem [shape: bf16[1,128], index: 11, kind: input, shape index: {}]   ;;  %s3119_s12 = inlined_call_operand.vmem [shape: bf16[1,128], index: 12, kind: input, shape index: {}]   ;;  %s3120_s14 = inlined_call_operand.vmem [shape: bf16[256,128], index: 14, kind: input, shape index: {}]   ;;  %s3121_s16 = inlined_call_operand.vmem [shape: bf16[128,256], index: 16, kind: input, shape index: {}]   ;;  %s3122_s15 = inlined_call_operand.vmem [shape: bf16[1,128], index: 15, kind: input, shape index: {}]   ;;  %s3123_s17 = inlined_call_operand.vmem [shape: bf16[1,256], index: 17, kind: input, shape index: {}]   ;;  %s3124_s18 = inlined_call_operand.vmem [shape: f32[32,256], index: 18, kind: output, shape index: {}]  }
   0x1   :  { %3128 = sst [smem:[#allocation2_spill]] %s3106_s5  ;;  %191 = vmatprep.subr.bf16.mxu0 %v2362_v0  ;;  %2142 = vset.pattern.permute.xlu0 %v2362_v0  ;;  %v2162_v21 = vld [vmem:[%s3109_s8 + $0xac] ss:$12 sps:$4 sm:$0xff]   ;;  %v2164_v22 = vld [vmem:[%s3109_s8 + $0xa8] ss:$12 sps:$4 sm:$0xff]   ;;  %v1982_v30 = vld [vmem:[%s3111_s1] sm:$0xff]  }
   0x2   :  { %3129 = sst [smem:[#allocation3_spill]] %s3107_s0  ;;  %2143 = vset.pattern.permute.xlu1 %v2362_v0  ;;  %543 = vmatprep.mubr.bf16.mxu1 %v2362_v0  ;;  %v2165_v23 = vld [vmem:[%s3109_s8 + $0x94] ss:$12 sps:$4 sm:$0xff]   ;;  %v2547_v25 = vshrl.u32 %v90_v24, 7  ;;  %v1983_v34 = vunpack.c.l.bf16 %v1982_v30  ;;  %v1984_v40 = vunpack.c.h.bf16 %v1982_v30  ;;  %v1989_v43 = vld [vmem:[%s3111_s1 + $0x8] sm:$0xff]   ;;  %vm857_vm2 = vcmask 785408  }
   0x3   :  { %3130 = sst [smem:[#allocation4_spill]] %s3108_s2  ;;  %511 = vmatprep.subr.bf16.mxu1 %v2162_v21  ;;  %v88_v26 = vld [vmem:[%s3110_s6] sm:$0x1]  ;;  %v1987_v50 = vunpack.c.l.bf16 %v1989_v43  ;;  %v1988_v57 = vunpack.c.h.bf16 %v1989_v43  ;;  %v2167_v63 = vld [vmem:[%s3109_s8 + $0x90] ss:$12 sps:$4 sm:$0xff]  }
   0x4   :  { %s3131_s29 = sld [smem:[#allocation2_spill]]  ;;  %512 = vmatpush1.bf16.msra.mxu1 %v2164_v22  ;;  %v89_v27 = vunpack.c.l.bf16 %v88_v26  ;;  %v2553_v28 = vsub.s32 0, %v2547_v25 }
   0x5   :  { %s3132_s23 = sld [smem:[#allocation3_spill]]  ;;  %513 = vmatprep.subr.bf16.mxu1 %v2165_v23 }
   0x6   :  { %s3133_s28 = sld [smem:[#allocation4_spill]]  ;;  %v93_v29 = vrot.slane %v89_v27, %v2553_v28  ;;  %v309_v27 = vld [vmem:[%s3112_s7] sm:$0x1] }
   0x7   :  { %v310_v30 = vunpack.c.l.bf16 %v309_v27 }
   0x8   :  { %514 = vmatpush1.bf16.msra.mxu1 %v2167_v63  ;;  %v362_v63 = vsub.s32 2, %v2547_v25 }
   0xa   :  { %v2144_v1 = vld [vmem:[%s3131_s29 + $0x38] sm:$0xff]   ;;  %v2145_v2 = vld [vmem:[%s3131_s29 + $0x30] sm:$0xff]   ;;  %v2146_v3 = vld [vmem:[%s3131_s29 + $0x28] sm:$0xff]  }
   0xb   :  { %192 = vmatpush1.bf16.msra.mxu0 %v2144_v1  ;;  %v2147_v4 = vld [vmem:[%s3131_s29 + $0x20] sm:$0xff]   ;;  %v2148_v6 = vld [vmem:[%s3131_s29 + $0x18] sm:$0xff]   ;;  %v2149_v11 = vld [vmem:[%s3131_s29 + $0x10] sm:$0xff]  }
   0xc   :  { %193 = vmatprep.subr.bf16.mxu0 %v2362_v0  ;;  %v2158_v5 = vld [vmem:[%s3132_s23 + $0x4] ss:$8 sps:$4 sm:$0xff]   ;;  %v242_v8 = vld [vmem:[%s3133_s28 + $0x10] sm:$0xff]  ;;  %v243_v10 = vld [vmem:[%s3133_s28 + $0x18] sm:$0xff] }
   0xd   :  { %v240_v7 = vld [vmem:[%s3133_s28] sm:$0xff]  ;;  %1875 = vmatprep.mubr.msk.bf16.mxu0 %vm184_vm0, %v2158_v5  ;;  %256 = vperm.xlu1 %2143, %v242_v8   ;;  %v241_v9 = vld [vmem:[%s3133_s28 + $0x8] sm:$0xff]  ;;  %v2152_v14 = vld [vmem:[%s3131_s29 + $0x58] sm:$0xff]  }
   0xe   :  { %246 = vperm.xlu0 %2142, %v240_v7   ;;  %v2150_v12 = vld [vmem:[%s3131_s29 + $0x8] sm:$0xff]   ;;  %v2151_v13 = vld [vmem:[%s3131_s29] sm:$0xff]   ;;  %v2153_v15 = vld [vmem:[%s3131_s29 + $0x50] sm:$0xff]  }
   0xf   :  { %194 = vmatpush1.bf16.msra.mxu0 %v2145_v2  ;;  %v2154_v16 = vld [vmem:[%s3131_s29 + $0x48] sm:$0xff]   ;;  %v2155_v17 = vld [vmem:[%s3131_s29 + $0x40] sm:$0xff]   ;;  %v2159_v19 = vld [vmem:[%s3132_s23 + $0x14] ss:$8 sps:$4 sm:$0xff]  }
  0x10   :  { %195 = vmatprep.subr.bf16.mxu0 %v2362_v0  ;;  %v2156_v18 = vld [vmem:[%s3132_s23] ss:$8 sps:$4 sm:$0xff]   ;;  %v2161_v20 = vld [vmem:[%s3132_s23 + $0x10] ss:$8 sps:$4 sm:$0xff]  }
  0x11   :  { %261 = vperm.xlu1 %2143, %v243_v10   ;;  %v2168_v2 = vld [vmem:[%s3109_s8 + $0x7c] ss:$12 sps:$4 sm:$0xff]   ;;  %v2173_v5 = vld [vmem:[%s3109_s8 + $0x60] ss:$12 sps:$4 sm:$0xff]  }
  0x12   :  { %251 = vperm.xlu0 %2142, %v241_v9   ;;  %515 = vmatprep.subr.bf16.mxu1 %v2168_v2  ;;  %v2176_v7 = vld [vmem:[%s3109_s8 + $0x48] ss:$12 sps:$4 sm:$0xff]   ;;  %v2179_v9 = vld [vmem:[%s3109_s8 + $0x30] ss:$12 sps:$4 sm:$0xff]  }
  0x13   :  { %196 = vmatpush1.bf16.msra.mxu0 %v2146_v3  ;;  %v2170_v3 = vld [vmem:[%s3109_s8 + $0x78] ss:$12 sps:$4 sm:$0xff]   ;;  %v2177_v8 = vld [vmem:[%s3109_s8 + $0x34] ss:$12 sps:$4 sm:$0xff]   ;;  %v2180_v10 = vld [vmem:[%s3109_s8 + $0x1c] ss:$12 sps:$4 sm:$0xff]  }
  0x14   :  { %197 = vmatprep.subr.bf16.mxu0 %v2362_v0  ;;  %516 = vmatpush1.bf16.msra.mxu1 %v2170_v3 }
  0x17   :  { %198 = vmatpush1.bf16.msra.mxu0 %v2147_v4  ;;  %v2171_v4 = vld [vmem:[%s3109_s8 + $0x64] ss:$12 sps:$4 sm:$0xff]  }
  0x18   :  { %199 = vmatprep.subr.bf16.mxu0 %v2362_v0  ;;  %517 = vmatprep.subr.bf16.mxu1 %v2171_v4 }
  0x19   :  { %518 = vmatpush1.bf16.msra.mxu1 %v2173_v5 }
  0x1b   :  { %200 = vmatpush1.bf16.msra.mxu0 %v2148_v6  ;;  %v2174_v6 = vld [vmem:[%s3109_s8 + $0x4c] ss:$12 sps:$4 sm:$0xff]  }
  0x1c   :  { %201 = vmatprep.subr.bf16.mxu0 %v2362_v0  ;;  %519 = vmatprep.subr.bf16.mxu1 %v2174_v6 }
  0x1d   :  { %520 = vmatpush1.bf16.msra.mxu1 %v2176_v7 }
  0x1e   :  { %521 = vmatprep.subr.bf16.mxu1 %v2177_v8 }
  0x1f   :  { %202 = vmatpush1.bf16.msra.mxu0 %v2149_v11  ;;  %v2182_v11 = vld [vmem:[%s3109_s8 + $0x18] ss:$12 sps:$4 sm:$0xff]  }
  0x20   :  { %203 = vmatprep.subr.bf16.mxu0 %v2362_v0 }
  0x21   :  { %522 = vmatpush1.bf16.msra.mxu1 %v2179_v9 }
  0x22   :  { %523 = vmatprep.subr.bf16.mxu1 %v2180_v10 }
  0x23   :  { %204 = vmatpush1.bf16.msra.mxu0 %v2150_v12  ;;  %v2183_v12 = vld [vmem:[%s3109_s8 + $0x4] ss:$12 sps:$4 sm:$0xff]  }
  0x24   :  { %205 = vmatprep.subr.bf16.mxu0 %v2362_v0 }
  0x25   :  { %524 = vmatpush1.bf16.msra.mxu1 %v2182_v11 }
  0x26   :  { %525 = vmatprep.subr.bf16.mxu1 %v2183_v12 }
  0x27   :  { %206 = vmatpush1.bf16.msra.mxu0 %v2151_v13  ;;  %v2185_v13 = vld [vmem:[%s3109_s8] ss:$12 sps:$4 sm:$0xff]  }
  0x28   :  { %215 = vmatprep.subr.bf16.mxu0 %v2362_v0 }
  0x29   :  { %526 = vmatpush1.bf16.msra.mxu1 %v2185_v13 }
  0x2b   :  { %216 = vmatpush2.bf16.msra.mxu0 %v2152_v14  ;;  %v2186_v14 = vld [vmem:[%s3109_s8 + $0xb0] ss:$12 sps:$4 sm:$0xff]  }
  0x2c   :  { %217 = vmatprep.subr.bf16.mxu0 %v2362_v0  ;;  %2058 = vmatprep.subr.bf16.mxu1 %v2186_v14 }
  0x2f   :  { %218 = vmatpush2.bf16.msra.mxu0 %v2153_v15 }
  0x30   :  { %219 = vmatprep.subr.bf16.mxu0 %v2362_v0 }
  0x33   :  { %220 = vmatpush2.bf16.msra.mxu0 %v2154_v16 }
  0x34   :  { %221 = vmatprep.subr.bf16.mxu0 %v2362_v0 }
  0x37   :  { %222 = vmatpush2.bf16.msra.mxu0 %v2155_v17 }
  0x3a   :  { %224 = vmatmul.mubr.bf16.vlgmr.msra.gmra.mxu0 %v2156_v18 }
  0x3b   :  { %1876 = vmatprep.mubr.msk.bf16.mxu0 %vm184_vm0, %v2159_v19 }
  0x42   :  { %232 = vmatmul.mubr.bf16.gmra.mxu0 %v2161_v20 }
  0x88   :  { %v257_v46 = vpop.permute.xlu1 %256 }
  0x89   :  { %v247_v31 = vpop.permute.xlu0 %246 }
  0x8c   :  { %v262_v58 = vpop.permute.xlu1 %261 }
  0x8d   :  { %v252_v41 = vpop.permute.xlu0 %251 }
  0xfa   :  { %v225_v32 = vpop.f32.mrf.mxu0 }
  0xfb   :  { %v226_v33 = vadd.f32 %v225_v32, %v93_v29 }
  0xfc   :  { %v227_v35 = vpop.f32.mrf.mxu0 }
  0xfd   :  { %v264_v36 = vmul.f32 %v247_v31, %v226_v33  ;;  %v314_v33 = vrot.slane %v310_v30, %v2553_v28 }
  0xfe   :  { %v228_v37 = vpop.f32.mrf.mxu0 }
  0xff   :  { %v2559_v38 = vadd.f32 %v1983_v34, %v264_v36  ;;  %v229_v39 = vadd.f32 %v228_v37, %v93_v29 }
 0x100   :  { %v230_v42 = vpop.f32.mrf.mxu0 }
 0x101   :  { %v265_v44 = vmul.f32 %v252_v41, %v229_v39  ;;  %v280_v45 = vmul.f32 %v2559_v38, %v2559_v38  ;;  %v2187_v41 = vld [vmem:[%s3109_s8 + $0x98] ss:$12 sps:$4 sm:$0xff]  }
 0x102   :  { %v233_v47 = vpop.f32.mrf.mxu0 }
 0x103   :  { %v2566_v48 = vadd.f32 %v1984_v40, %v265_v44  ;;  %v234_v49 = vadd.f32 %v233_v47, %v93_v29  ;;  %284 = vadd.xlane.f32.xlu0 %v280_v45  ;;  %v2188_v44 = vld [vmem:[%s3109_s8 + $0x80] ss:$12 sps:$4 sm:$0xff]  }
 0x104   :  { %v235_v51 = vpop.f32.mrf.mxu0 }
 0x105   :  { %v266_v52 = vmul.f32 %v257_v46, %v234_v49  ;;  %v281_v53 = vmul.f32 %v2566_v48, %v2566_v48  ;;  %v2190_v51 = vld [vmem:[%s3109_s8 + $0x50] ss:$12 sps:$4 sm:$0xff]  }
 0x106   :  { %v236_v54 = vpop.f32.mrf.mxu0 }
 0x107   :  { %v2570_v55 = vadd.f32 %v1987_v50, %v266_v52  ;;  %v237_v56 = vadd.f32 %v236_v54, %v93_v29  ;;  %286 = vadd.xlane.f32.xlu1 %v281_v53  ;;  %v2189_v50 = vld [vmem:[%s3109_s8 + $0x68] ss:$12 sps:$4 sm:$0xff]   ;;  %v2191_v52 = vld [vmem:[%s3109_s8 + $0x38] ss:$12 sps:$4 sm:$0xff]   ;;  %v2192_v53 = vld [vmem:[%s3109_s8 + $0x20] ss:$12 sps:$4 sm:$0xff]  }
 0x108   :  { %v238_v59 = vpop.f32.mrf.mxu0  ;;  %v2193_v54 = vld [vmem:[%s3109_s8 + $0x8] ss:$12 sps:$4 sm:$0xff]   ;;  %s2365_s8 = smov 32  }
 0x109   :  { %v267_v60 = vmul.f32 %v262_v58, %v237_v56  ;;  %v282_v61 = vmul.f32 %v2570_v55, %v2570_v55  ;;  %v353_v56 = vld [vmem:[%s3113_s9] sm:$0x7] }
 0x10b   :  { %v2574_v62 = vadd.f32 %v1988_v57, %v267_v60  ;;  %288 = vadd.xlane.f32.xlu0 %v282_v61  ;;  %v354_v57 = vunpack.c.l.bf16 %v353_v56 }
 0x10d   :  { %v283_v1 = vmul.f32 %v2574_v62, %v2574_v62  ;;  %v359_v58 = vrot.slane %v354_v57, %v2553_v28  ;;  %v363_v5 = vrot.slane %v354_v57, %v362_v63 }
 0x10f   :  { %290 = vadd.xlane.f32.xlu0 %v283_v1  ;;  %v374_v60 = vrot.slane %v359_v58, %v2553_v28  ;;  %v378_v10 = vrot.slane %v363_v5, %v2553_v28  ;;  %v619_v58 = vld [vmem:[%s3114_s4 + $0x30] sm:$0xff] }
 0x18c   :  { %v285_v15 = vpop.xlane.xlu0 %284 }
 0x18d   :  { %v293_v16 = vmul.f32 0.0078125, %v285_v15 }
 0x18f   :  { %v297_v17 = vadd.f32 1e-06, %v293_v16  ;;  %v627_v16 = vld [vmem:[%s3114_s4 + $0x70] sm:$0xff] }
 0x190   :  { %v287_v18 = vpop.xlane.xlu1 %286 }
 0x191   :  { %2290 = vrsqrt.f32 %v297_v17  ;;  %v294_v19 = vmul.f32 0.0078125, %v287_v18  ;;  %v628_v17 = vld [vmem:[%s3114_s4 + $0x78] sm:$0xff]  ;;  %v626_v18 = vld [vmem:[%s3114_s4 + $0x68] sm:$0xff] }
 0x193   :  { %v298_v20 = vadd.f32 1e-06, %v294_v19 }
 0x194   :  { %v289_v21 = vpop.xlane.xlu0 %288 }
 0x195   :  { %2292 = vrsqrt.f32 %v298_v20  ;;  %v295_v22 = vmul.f32 0.0078125, %v289_v21 }
 0x197   :  { %v299_v23 = vadd.f32 1e-06, %v295_v22  ;;  %v625_v22 = vld [vmem:[%s3114_s4 + $0x60] sm:$0xff] }
 0x198   :  { %v291_v24 = vpop.xlane.xlu0 %290 }
 0x199   :  { %2294 = vrsqrt.f32 %v299_v23  ;;  %v296_v26 = vmul.f32 0.0078125, %v291_v24 }
 0x19b   :  { %v300_v29 = vadd.f32 1e-06, %v296_v26 }
 0x19d   :  { %2296 = vrsqrt.f32 %v300_v29 }
 0x19e   :  { %v2291_v31 = vpop.eup %2290 }
 0x19f   :  { %v305_v32 = vmul.f32 %v2291_v31, %v2559_v38  ;;  %v624_v31 = vld [vmem:[%s3114_s4 + $0x58] sm:$0xff] }
 0x1a1   :  { %v315_v36 = vmul.f32 %v314_v33, %v305_v32  ;;  %v366_v32 = vsub.s32 4, %v2547_v25 }
 0x1a2   :  { %v2293_v34 = vpop.eup %2292 }
 0x1a3   :  { %v306_v35 = vmul.f32 %v2293_v34, %v2566_v48 }
 0x1a5   :  { %v316_v37 = vmul.f32 %v314_v33, %v306_v35  ;;  %v367_v35 = vrot.slane %v354_v57, %v366_v32 }
 0x1a6   :  { %v2295_v39 = vpop.eup %2294 }
 0x1a7   :  { %v319_v40 = vpack.c.bf16 %v316_v37, %v315_v36  ;;  %v307_v42 = vmul.f32 %v2295_v39, %v2570_v55  ;;  %v622_v39 = vld [vmem:[%s3114_s4 + $0x48] sm:$0xff] }
 0x1a9   :  { %544 = vmatmul.mubr.bf16.vlgmr.msra.gmra.mxu1 %v319_v40  ;;  %v317_v46 = vmul.f32 %v314_v33, %v307_v42  ;;  %v621_v42 = vld [vmem:[%s3114_s4 + $0x40] sm:$0xff] }
 0x1aa   :  { %v2297_v43 = vpop.eup %2296  ;;  %2059 = vmatpush3.bf16.msra.mxu1 %v2186_v14  ;;  %553 = vmatprep.mubr.bf16.mxu1 %v2362_v0 }
 0x1ab   :  { %2060 = vmatprep.subr.bf16.mxu1 %v2187_v41  ;;  %v308_v45 = vmul.f32 %v2297_v43, %v2574_v62 }
 0x1ad   :  { %v318_v47 = vmul.f32 %v314_v33, %v308_v45  ;;  %v623_v33 = vld [vmem:[%s3114_s4 + $0x50] sm:$0xff] }
 0x1ae   :  { %2061 = vmatpush3.bf16.msra.mxu1 %v2187_v41 }
 0x1af   :  { %2062 = vmatprep.subr.bf16.mxu1 %v2188_v44  ;;  %v320_v49 = vpack.c.bf16 %v318_v47, %v317_v46 }
 0x1b1   :  { %554 = vmatmul.mubr.bf16.gmra.mxu1 %v320_v49 }
 0x1b2   :  { %2063 = vmatpush3.bf16.msra.mxu1 %v2188_v44  ;;  %2074 = vmatprep.mubr.bf16.mxu1 %v319_v40  ;;  %v382_v40 = vrot.slane %v367_v35, %v2553_v28 }
 0x1b3   :  { %2064 = vmatprep.subr.bf16.mxu1 %v2189_v50 }
 0x1b6   :  { %2065 = vmatpush3.bf16.msra.mxu1 %v2189_v50 }
 0x1b7   :  { %2066 = vmatprep.subr.bf16.mxu1 %v2190_v51 }
 0x1ba   :  { %2067 = vmatpush3.bf16.msra.mxu1 %v2190_v51 }
 0x1bb   :  { %2068 = vmatprep.subr.bf16.mxu1 %v2191_v52 }
 0x1be   :  { %2069 = vmatpush3.bf16.msra.mxu1 %v2191_v52 }
 0x1bf   :  { %2070 = vmatprep.subr.bf16.mxu1 %v2192_v53 }
 0x1c2   :  { %2071 = vmatpush3.bf16.msra.mxu1 %v2192_v53  ;;  %v620_v53 = vld [vmem:[%s3114_s4 + $0x38] sm:$0xff] }
 0x1c3   :  { %2072 = vmatprep.subr.bf16.mxu1 %v2193_v54 }
 0x1c6   :  { %2073 = vmatpush3.bf16.msra.mxu1 %v2193_v54 }
 0x1c9   :  { %2075 = vmatmul.mubr.bf16.vlgmr.msra.gmra.mxu1 %v320_v49 }
 0x269   :  { %v545_v59 = vpop.f32.mrf.mxu1 }
 0x26a   :  { %v546_v2 = vadd.f32 %v545_v59, %v374_v60 }
 0x26b   :  { %v547_v61 = vpop.f32.mrf.mxu1 }
 0x26c   :  { %v2676_v19 = vadd.f32 %v547_v61, %v378_v10 }
 0x26d   :  { %v549_v1 = vpop.f32.mrf.mxu1 }
 0x26e   :  { %v550_v3 = vadd.f32 %v549_v1, %v374_v60  ;;  %v641_v29 = vmul.f32 %v625_v22, %v2676_v19  ;;  %v637_v46 = vmul.f32 %v621_v42, %v2676_v19 }
 0x26f   :  { %v551_v4 = vpop.f32.mrf.mxu1 }
 0x270   :  { %v677_v6 = vpack.c.bf16 %v550_v3, %v546_v2  ;;  %v2661_v12 = vadd.f32 %v551_v4, %v378_v10 }
 0x271   :  { %v555_v7 = vpop.f32.mrf.mxu1 }
 0x272   :  { %v2658_v8 = vadd.f32 %v555_v7, %v374_v60  ;;  %2094 = vmatprep.mubr.bf16.mxu0 %v677_v6  ;;  %v642_v26 = vmul.f32 %v626_v18, %v2661_v12  ;;  %v638_v43 = vmul.f32 %v622_v39, %v2661_v12  ;;  %v618_v7 = vld [vmem:[%s3114_s4 + $0x28] sm:$0xff] }
 0x273   :  { %v557_v9 = vpop.f32.mrf.mxu1 }
 0x274   :  { %v2663_v13 = vadd.f32 %v557_v9, %v378_v10  ;;  %v651_v30 = vpack.c.bf16 %v642_v26, %v641_v29  ;;  %v649_v51 = vpack.c.bf16 %v638_v43, %v637_v46  ;;  %v616_v26 = vld [vmem:[%s3114_s4 + $0x18] sm:$0xff] }
 0x275   :  { %v559_v11 = vpop.f32.mrf.mxu1 }
 0x276   :  { %v2665_v14 = vadd.f32 %v559_v11, %v374_v60  ;;  %v643_v23 = vmul.f32 %v627_v16, %v2663_v13  ;;  %v639_v36 = vmul.f32 %v623_v33, %v2663_v13  ;;  %v635_v3 = vmul.f32 %v619_v58, %v2663_v13  ;;  %v617_v11 = vld [vmem:[%s3114_s4 + $0x20] sm:$0xff] }
 0x277   :  { %v561_v15 = vpop.f32.mrf.mxu1 }
 0x278   :  { %v678_v20 = vpack.c.bf16 %v2665_v14, %v2658_v8  ;;  %v2680_v21 = vadd.f32 %v561_v15, %v378_v10  ;;  %v733_v8 = vld [vmem:[%s3115_s3 + $0x8] sm:$0xff] }
 0x27a   :  { %v644_v24 = vmul.f32 %v628_v17, %v2680_v21  ;;  %v640_v34 = vmul.f32 %v624_v31, %v2680_v21  ;;  %v636_v1 = vmul.f32 %v620_v53, %v2680_v21  ;;  %v632_v32 = vmul.f32 %v616_v26, %v2680_v21  ;;  %v613_v21 = vld [vmem:[%s3114_s4] sm:$0xff] }
 0x27c   :  { %v652_v27 = vpack.c.bf16 %v644_v24, %v643_v23  ;;  %v650_v37 = vpack.c.bf16 %v640_v34, %v639_v36  ;;  %v648_v5 = vpack.c.bf16 %v636_v1, %v635_v3 }
 0x27e   :  { %2078 = vmatprep.subr.bf16.mxu0 %v652_v27 }
 0x27f   :  { %2079 = vmatpush3.bf16.xpose.msra.mxu0 %v652_v27 }
 0x280   :  { %2080 = vmatprep.subr.bf16.mxu0 %v651_v30 }
 0x287   :  { %2081 = vmatpush3.bf16.xpose.msra.mxu0 %v651_v30  ;;  %v615_v30 = vld [vmem:[%s3114_s4 + $0x10] sm:$0xff] }
 0x288   :  { %2082 = vmatprep.subr.bf16.mxu0 %v650_v37  ;;  %v631_v34 = vmul.f32 %v615_v30, %v2663_v13 }
 0x289   :  { %v2076_v41 = vpop.f32.mrf.mxu1 }
 0x28a   :  { %v607_v45 = vadd.f32 %v2076_v41, %v382_v40  ;;  %v646_v36 = vpack.c.bf16 %v632_v32, %v631_v34 }
 0x28b   :  { %v598_v44 = vpop.f32.mrf.mxu1 }
 0x28c   :  { %v2707_v49 = vadd.f32 %v598_v44, %v382_v40  ;;  %v667_v56 = vmul.f32 %v627_v16, %v607_v45  ;;  %v663_v6 = vmul.f32 %v623_v33, %v607_v45  ;;  %v634_v16 = vmul.f32 %v618_v7, %v2661_v12 }
 0x28d   :  { %v2077_v47 = vpop.f32.mrf.mxu1  ;;  %v659_v24 = vmul.f32 %v619_v58, %v607_v45  ;;  %v629_v44 = vmul.f32 %v613_v21, %v2676_v19 }
 0x28e   :  { %v610_v50 = vadd.f32 %v2077_v47, %v382_v40  ;;  %v665_v60 = vmul.f32 %v625_v22, %v2707_v49  ;;  %v661_v15 = vmul.f32 %v621_v42, %v2707_v49  ;;  %v653_v13 = vmul.f32 %v613_v21, %v2707_v49 }
 0x28f   :  { %v601_v52 = vpop.f32.mrf.mxu1  ;;  %2083 = vmatpush3.bf16.xpose.msra.mxu0 %v650_v37  ;;  %v655_v37 = vmul.f32 %v615_v30, %v607_v45 }
 0x290   :  { %v602_v54 = vadd.f32 %v601_v52, %v382_v40  ;;  %2084 = vmatprep.subr.bf16.mxu0 %v649_v51  ;;  %v668_v57 = vmul.f32 %v628_v17, %v610_v50  ;;  %v664_v4 = vmul.f32 %v624_v31, %v610_v50  ;;  %v660_v22 = vmul.f32 %v620_v53, %v610_v50  ;;  %v734_v53 = vld [vmem:[%s3115_s3 + $0x10] sm:$0xff] }
 0x291   :  { %v657_v31 = vmul.f32 %v617_v11, %v2707_v49  ;;  %v656_v35 = vmul.f32 %v616_v26, %v610_v50 }
 0x292   :  { %v676_v59 = vpack.c.bf16 %v668_v57, %v667_v56  ;;  %v666_v61 = vmul.f32 %v626_v18, %v602_v54  ;;  %v674_v9 = vpack.c.bf16 %v664_v4, %v663_v6  ;;  %v662_v10 = vmul.f32 %v622_v39, %v602_v54  ;;  %v614_v39 = vld [vmem:[%s3114_s4 + $0x8] sm:$0xff]  ;;  %v735_v57 = vld [vmem:[%s3115_s3 + $0x18] sm:$0xff] }
 0x293   :  { %v633_v18 = vmul.f32 %v617_v11, %v2676_v19  ;;  %v672_v27 = vpack.c.bf16 %v660_v22, %v659_v24  ;;  %v658_v29 = vmul.f32 %v618_v7, %v602_v54  ;;  %v670_v40 = vpack.c.bf16 %v656_v35, %v655_v37 }
 0x294   :  { %2098 = vmatprep.subr.bf16.mxu1 %v676_v59  ;;  %v675_v2 = vpack.c.bf16 %v666_v61, %v665_v60  ;;  %v673_v17 = vpack.c.bf16 %v662_v10, %v661_v15  ;;  %v654_v41 = vmul.f32 %v614_v39, %v602_v54  ;;  %v630_v42 = vmul.f32 %v614_v39, %v2661_v12  ;;  %v732_v12 = vld [vmem:[%s3115_s3] sm:$0xff]  ;;  %s2363_s3 = smov 96  }
 0x295   :  { %2099 = vmatpush3.bf16.msra.mxu1 %v676_v59  ;;  %v647_v23 = vpack.c.bf16 %v634_v16, %v633_v18  ;;  %v671_v33 = vpack.c.bf16 %v658_v29, %v657_v31 }
 0x296   :  { %2100 = vmatprep.subr.bf16.mxu1 %v675_v2  ;;  %v669_v43 = vpack.c.bf16 %v654_v41, %v653_v13  ;;  %v645_v45 = vpack.c.bf16 %v630_v42, %v629_v44 }
 0x297   :  { %2085 = vmatpush3.bf16.xpose.msra.mxu0 %v649_v51 }
 0x298   :  { %2086 = vmatprep.subr.bf16.mxu0 %v648_v5 }
 0x299   :  { %2101 = vmatpush3.bf16.msra.mxu1 %v675_v2 }
 0x29a   :  { %2102 = vmatprep.subr.bf16.mxu1 %v674_v9 }
 0x29d   :  { %2103 = vmatpush3.bf16.msra.mxu1 %v674_v9 }
 0x29e   :  { %2104 = vmatprep.subr.bf16.mxu1 %v673_v17 }
 0x29f   :  { %2087 = vmatpush3.bf16.xpose.msra.mxu0 %v648_v5 }
 0x2a0   :  { %2088 = vmatprep.subr.bf16.mxu0 %v647_v23 }
 0x2a1   :  { %2105 = vmatpush3.bf16.msra.mxu1 %v673_v17 }
 0x2a2   :  { %2106 = vmatprep.subr.bf16.mxu1 %v672_v27 }
 0x2a5   :  { %2107 = vmatpush3.bf16.msra.mxu1 %v672_v27 }
 0x2a6   :  { %2108 = vmatprep.subr.bf16.mxu1 %v671_v33 }
 0x2a7   :  { %2089 = vmatpush3.bf16.xpose.msra.mxu0 %v647_v23 }
 0x2a8   :  { %2090 = vmatprep.subr.bf16.mxu0 %v646_v36 }
 0x2a9   :  { %2109 = vmatpush3.bf16.msra.mxu1 %v671_v33 }
 0x2aa   :  { %2110 = vmatprep.subr.bf16.mxu1 %v670_v40 }
 0x2ad   :  { %2111 = vmatpush3.bf16.msra.mxu1 %v670_v40 }
 0x2ae   :  { %2112 = vmatprep.subr.bf16.mxu1 %v669_v43 }
 0x2af   :  { %2091 = vmatpush3.bf16.xpose.msra.mxu0 %v646_v36 }
 0x2b0   :  { %2092 = vmatprep.subr.bf16.mxu0 %v645_v45 }
 0x2b1   :  { %2113 = vmatpush3.bf16.msra.mxu1 %v669_v43 }
 0x2b7   :  { %2093 = vmatpush3.bf16.xpose.msra.mxu0 %v645_v45 }
 0x2be   :  { %2095 = vmatmul.mubr.bf16.vlgmr.msra.gmra.mxu0 %v678_v20 }
 0x2bf   :  { %1314 = vmatprep.mubr.bf16.mxu0 %v2362_v0 }
 0x37e   :  { %v2096_v46 = vpop.f32.mrf.mxu0 }
 0x37f   :  { %v730_v50 = vmul.f32 0.17677669, %v2096_v46 }
 0x380   :  { %v713_v47 = vpop.f32.mrf.mxu0 }
 0x381   :  { %v728_v19 = vmul.f32 0.17677669, %v713_v47  ;;  %v738_v54 = vadd.f32 %v734_v53, %v730_v50  ;;  %v2194_v50 = vld [vmem:[%s3116_s10 + $0x38] sm:$0xff]   ;;  %v2196_v53 = vld [vmem:[%s3116_s10 + $0x28] sm:$0xff]  }
 0x382   :  { %v2097_v49 = vpop.f32.mrf.mxu0  ;;  %2118 = vmatprep.subr.bf16.mxu1 %v2194_v50 }
 0x383   :  { %v736_v51 = vadd.f32 %v732_v12, %v728_v19  ;;  %v731_v20 = vmul.f32 0.17677669, %v2097_v49 }
 0x384   :  { %v716_v52 = vpop.f32.mrf.mxu0 }
 0x385   :  { %v729_v14 = vmul.f32 0.17677669, %v716_v52  ;;  %740 = vmax.xlane.f32.xlu1 %v736_v51  ;;  %v739_v58 = vadd.f32 %v735_v57, %v731_v20  ;;  %v2195_v52 = vld [vmem:[%s3116_s10 + $0x30] sm:$0xff]  }
 0x386   :  { %v2199_v20 = vld [vmem:[%s3116_s10 + $0x10] sm:$0xff]  }
 0x387   :  { %v737_v56 = vadd.f32 %v733_v8, %v729_v14  ;;  %v2197_v8 = vld [vmem:[%s3116_s10 + $0x20] sm:$0xff]   ;;  %v2198_v14 = vld [vmem:[%s3116_s10 + $0x18] sm:$0xff]  }
 0x389   :  { %744 = vmax.xlane.f32.xlu1 %v738_v54  ;;  %742 = vmax.xlane.f32.xlu0 %v737_v56 }
 0x38d   :  { %746 = vmax.xlane.f32.xlu0 %v739_v58 }
 0x40e   :  { %v741_v59 = vpop.xlane.xlu1 %740 }
 0x40f   :  { %v748_v60 = vsub.f32 %v736_v51, %v741_v59 }
 0x411   :  { %v752_v61 = vmul.f32 1.442695, %v748_v60 }
 0x412   :  { %v745_v1 = vpop.xlane.xlu1 %744  ;;  %v743_v2 = vpop.xlane.xlu0 %742 }
 0x413   :  { %v750_v3 = vsub.f32 %v738_v54, %v745_v1  ;;  %v749_v4 = vsub.f32 %v737_v56, %v743_v2  ;;  %2298 = vpow2.f32 %v752_v61  ;;  %v2200_v54 = vld [vmem:[%s3116_s10 + $0x8] sm:$0xff]   ;;  %v2201_v56 = vld [vmem:[%s3116_s10] sm:$0xff]  }
 0x415   :  { %v756_v5 = vmul.f32 1.442695, %v750_v3  ;;  %v754_v6 = vmul.f32 1.442695, %v749_v4 }
 0x416   :  { %v747_v7 = vpop.xlane.xlu0 %746 }
 0x417   :  { %2300 = vpow2.f32 %v756_v5  ;;  %v751_v9 = vsub.f32 %v739_v58, %v747_v7 }
 0x418   :  { %2302 = vpow2.f32 %v754_v6 }
 0x419   :  { %v758_v10 = vmul.f32 1.442695, %v751_v9 }
 0x41b   :  { %2304 = vpow2.f32 %v758_v10 }
 0x420   :  { %v2299_v11 = vpop.eup %2298 }
 0x421   :  { %v761_v23 = vsel %vm760_vm1, %v2299_v11, 0.0 }
 0x424   :  { %v2301_v15 = vpop.eup %2300 }
 0x425   :  { %v2303_v16 = vpop.eup %2302  ;;  %781 = vrot.lane.b32.xlu1 %v2301_v15, %s2363_s3  ;;  %805 = vrot.lane.b32.xlu0 %v2301_v15, %s2364_s20  ;;  %v767_v26 = vsel %vm760_vm1, %v2301_v15, 0.0 }
 0x426   :  { %v866_v17 = vpack.c.bf16 %v2303_v16, %v2299_v11  ;;  %v764_v27 = vsel %vm760_vm1, %v2303_v16, 0.0 }
 0x428   :  { %v2305_v18 = vpop.eup %2304  ;;  %2114 = vmatprep.mubr.bf16.mxu1 %v866_v17 }
 0x429   :  { %777 = vrot.lane.b32.xlu1 %v2299_v11, %s2363_s3  ;;  %801 = vrot.lane.b32.xlu0 %v2299_v11, %s2364_s20  ;;  %v867_v22 = vpack.c.bf16 %v2305_v18, %v2301_v15  ;;  %v770_v24 = vsel %vm760_vm1, %v2305_v18, 0.0 }
 0x42b   :  { %2115 = vmatmul.mubr.bf16.vlgmr.msra.gmra.mxu1 %v867_v22 }
 0x42c   :  { %2119 = vmatpush3.bf16.msra.mxu1 %v2194_v50 }
 0x42d   :  { %825 = vrot.lane.b32.xlu0 %v2299_v11, %s2365_s8  ;;  %783 = vrot.lane.b32.xlu1 %v2305_v18, %s2363_s3 }
 0x42e   :  { %2120 = vmatprep.subr.bf16.mxu1 %v2195_v52 }
 0x430   :  { %2121 = vmatpush3.bf16.msra.mxu1 %v2195_v52 }
 0x431   :  { %779 = vrot.lane.b32.xlu0 %v2303_v16, %s2363_s3  ;;  %807 = vrot.lane.b32.xlu1 %v2305_v18, %s2364_s20 }
 0x432   :  { %2122 = vmatprep.subr.bf16.mxu1 %v2196_v53 }
 0x434   :  { %2123 = vmatpush3.bf16.msra.mxu1 %v2196_v53 }
 0x435   :  { %829 = vrot.lane.b32.xlu0 %v2301_v15, %s2365_s8  ;;  %803 = vrot.lane.b32.xlu1 %v2303_v16, %s2364_s20 }
 0x436   :  { %2124 = vmatprep.subr.bf16.mxu1 %v2197_v8 }
 0x438   :  { %2125 = vmatpush3.bf16.msra.mxu1 %v2197_v8 }
 0x439   :  { %827 = vrot.lane.b32.xlu1 %v2303_v16, %s2365_s8  ;;  %2126 = vmatprep.subr.bf16.mxu1 %v2198_v14 }
 0x43c   :  { %2127 = vmatpush3.bf16.msra.mxu1 %v2198_v14 }
 0x43d   :  { %831 = vrot.lane.b32.xlu1 %v2305_v18, %s2365_s8  ;;  %2128 = vmatprep.subr.bf16.mxu1 %v2199_v20 }
 0x440   :  { %2129 = vmatpush3.bf16.msra.mxu1 %v2199_v20 }
 0x441   :  { %2130 = vmatprep.subr.bf16.mxu1 %v2200_v54 }
 0x444   :  { %2131 = vmatpush3.bf16.msra.mxu1 %v2200_v54 }
 0x445   :  { %2132 = vmatprep.subr.bf16.mxu1 %v2201_v56 }
 0x448   :  { %2133 = vmatpush3.bf16.msra.mxu1 %v2201_v56 }
 0x454   :  { %762 = vadd.xlane.f32.xlu0 %v761_v23 }
 0x458   :  { %771 = vadd.xlane.f32.xlu0 %v770_v24 }
 0x461   :  { %768 = vadd.xlane.f32.xlu1 %v767_v26 }
 0x465   :  { %765 = vadd.xlane.f32.xlu1 %v764_v27 }
 0x497   :  { %v782_v29 = vpop.permute.xlu1 %781  ;;  %v806_v30 = vpop.permute.xlu0 %805 }
 0x498   :  { %v795_v31 = vsel %vm760_vm1, %v782_v29, 0.0  ;;  %v819_v35 = vsel %vm760_vm1, %v806_v30, 0.0 }
 0x499   :  { %796 = vadd.xlane.f32.xlu1 %v795_v31 }
 0x49b   :  { %v778_v32 = vpop.permute.xlu1 %777  ;;  %v802_v33 = vpop.permute.xlu0 %801 }
 0x49c   :  { %v789_v34 = vsel %vm760_vm1, %v778_v32, 0.0  ;;  %v813_v40 = vsel %vm760_vm1, %v802_v33, 0.0 }
 0x49d   :  { %790 = vadd.xlane.f32.xlu0 %v789_v34  ;;  %820 = vadd.xlane.f32.xlu1 %v819_v35 }
 0x49f   :  { %v784_v36 = vpop.permute.xlu1 %783  ;;  %v826_v37 = vpop.permute.xlu0 %825 }
 0x4a0   :  { %v798_v39 = vsel %vm760_vm1, %v784_v36, 0.0  ;;  %v837_v42 = vsel %vm760_vm1, %v826_v37, 0.0 }
 0x4a1   :  { %799 = vadd.xlane.f32.xlu0 %v798_v39  ;;  %814 = vadd.xlane.f32.xlu1 %v813_v40 }
 0x4a3   :  { %v808_v41 = vpop.permute.xlu1 %807  ;;  %v780_v21 = vpop.permute.xlu0 %779 }
 0x4a4   :  { %v822_v13 = vsel %vm760_vm1, %v808_v41, 0.0  ;;  %v792_v45 = vsel %vm760_vm1, %v780_v21, 0.0 }
 0x4a5   :  { %823 = vadd.xlane.f32.xlu0 %v822_v13  ;;  %838 = vadd.xlane.f32.xlu1 %v837_v42 }
 0x4a7   :  { %v804_v43 = vpop.permute.xlu1 %803  ;;  %v830_v44 = vpop.permute.xlu0 %829 }
 0x4a8   :  { %v843_v46 = vsel %vm760_vm1, %v830_v44, 0.0  ;;  %v816_v12 = vsel %vm760_vm1, %v804_v43, 0.0 }
 0x4a9   :  { %793 = vadd.xlane.f32.xlu0 %v792_v45  ;;  %844 = vadd.xlane.f32.xlu1 %v843_v46  ;;  %v2202_v46 = vld [vmem:[%s3117_s13 + $0xe0] ss:$16 sps:$4 sm:$0xff]  }
 0x4ab   :  { %v828_v47 = vpop.permute.xlu1 %827 }
 0x4ac   :  { %v840_v19 = vsel %vm760_vm1, %v828_v47, 0.0  ;;  %v2204_v47 = vld [vmem:[%s3117_s13 + $0xe4] ss:$16 sps:$4 sm:$0xff]  }
 0x4ad   :  { %817 = vadd.xlane.f32.xlu0 %v816_v12  ;;  %v2205_v12 = vld [vmem:[%s3117_s13 + $0xe8] ss:$16 sps:$4 sm:$0xff]   ;;  %1282 = vmatprep.subr.bf16.mxu0 %v2204_v47 }
 0x4ae   :  { %1283 = vmatpush1.bf16.msra.mxu0 %v2202_v46 }
 0x4af   :  { %v832_v49 = vpop.permute.xlu1 %831 }
 0x4b0   :  { %v846_v51 = vsel %vm760_vm1, %v832_v49, 0.0  ;;  %v1040_v49 = vld [vmem:[%s3118_s11] sm:$0x1] }
 0x4b1   :  { %841 = vadd.xlane.f32.xlu0 %v840_v19  ;;  %v2207_v19 = vld [vmem:[%s3117_s13 + $0xec] ss:$16 sps:$4 sm:$0xff]   ;;  %v1041_v50 = vunpack.c.l.bf16 %v1040_v49 }
 0x4b2   :  { %1335 = vmatprep.subr.bf16.mxu1 %v2207_v19  ;;  %v1078_v19 = vld [vmem:[%s3119_s12] sm:$0x1] }
 0x4b3   :  { %v1045_v8 = vrot.slane %v1041_v50, %v2553_v28  ;;  %v1079_v49 = vunpack.c.l.bf16 %v1078_v19 }
 0x4b5   :  { %847 = vadd.xlane.f32.xlu0 %v846_v51 }
 0x4dd   :  { %v763_v58 = vpop.xlane.xlu0 %762 }
 0x4e1   :  { %v772_v60 = vpop.xlane.xlu0 %771 }
 0x4ea   :  { %v769_v57 = vpop.xlane.xlu1 %768 }
 0x4eb   :  { %v2116_v29 = vpop.f32.mrf.mxu1 }
 0x4ed   :  { %v902_v34 = vpop.f32.mrf.mxu1 }
 0x4ee   :  { %v766_v59 = vpop.xlane.xlu1 %765 }
 0x4ef   :  { %v2117_v35 = vpop.f32.mrf.mxu1 }
 0x4f1   :  { %v905_v39 = vpop.f32.mrf.mxu1 }
 0x522   :  { %v797_v61 = vpop.xlane.xlu1 %796 }
 0x523   :  { %v851_v17 = vsel %vm760_vm1, %v769_v57, %v797_v61 }
 0x526   :  { %v821_v1 = vpop.xlane.xlu1 %820  ;;  %v791_v2 = vpop.xlane.xlu0 %790 }
 0x527   :  { %v849_v9 = vsel %vm760_vm1, %v763_v58, %v791_v2  ;;  %v855_v22 = vsel %vm184_vm0, %v851_v17, %v821_v1  ;;  %v2213_v2 = vld [vmem:[%s3117_s13 + $0xcc] ss:$16 sps:$4 sm:$0xff]   ;;  %v2226_v17 = vld [vmem:[%s3117_s13 + $0x60] ss:$16 sps:$4 sm:$0xff]  }
 0x52a   :  { %v800_v3 = vpop.xlane.xlu0 %799  ;;  %v815_v4 = vpop.xlane.xlu1 %814 }
 0x52b   :  { %v853_v10 = vsel %vm184_vm0, %v849_v9, %v815_v4  ;;  %v852_v30 = vsel %vm760_vm1, %v772_v60, %v800_v3  ;;  %v2208_v3 = vld [vmem:[%s3117_s13 + $0xc0] ss:$16 sps:$4 sm:$0xff]   ;;  %v2211_v4 = vld [vmem:[%s3117_s13 + $0xc8] ss:$16 sps:$4 sm:$0xff]  }
 0x52c   :  { %v2217_v9 = vld [vmem:[%s3117_s13 + $0xa8] ss:$16 sps:$4 sm:$0xff]  }
 0x52e   :  { %v824_v5 = vpop.xlane.xlu0 %823  ;;  %v839_v6 = vpop.xlane.xlu1 %838 }
 0x52f   :  { %v858_v15 = vsel %vm857_vm2, %v853_v10, %v839_v6  ;;  %v856_v31 = vsel %vm184_vm0, %v852_v30, %v824_v5  ;;  %v2216_v5 = vld [vmem:[%s3117_s13 + $0xa4] ss:$16 sps:$4 sm:$0xff]   ;;  %v2219_v6 = vld [vmem:[%s3117_s13 + $0xac] ss:$16 sps:$4 sm:$0xff]  }
 0x530   :  { %2306 = vrcp.f32 %v858_v15  ;;  %v2222_v10 = vld [vmem:[%s3117_s13 + $0x84] ss:$16 sps:$4 sm:$0xff]   ;;  %v2220_v15 = vld [vmem:[%s3117_s13 + $0x80] ss:$16 sps:$4 sm:$0xff]  }
 0x531   :  { %v2240_v30 = vld [vmem:[%s3117_s13 + $0x24] ss:$16 sps:$4 sm:$0xff]  }
 0x532   :  { %v794_v7 = vpop.xlane.xlu0 %793  ;;  %v845_v16 = vpop.xlane.xlu1 %844 }
 0x533   :  { %v850_v18 = vsel %vm760_vm1, %v766_v59, %v794_v7  ;;  %v860_v26 = vsel %vm857_vm2, %v855_v22, %v845_v16  ;;  %v2214_v7 = vld [vmem:[%s3117_s13 + $0xa0] ss:$16 sps:$4 sm:$0xff]   ;;  %v2223_v16 = vld [vmem:[%s3117_s13 + $0x88] ss:$16 sps:$4 sm:$0xff]  }
 0x534   :  { %v2229_v22 = vld [vmem:[%s3117_s13 + $0x68] ss:$16 sps:$4 sm:$0xff]  }
 0x536   :  { %v818_v11 = vpop.xlane.xlu0 %817 }
 0x537   :  { %v854_v23 = vsel %vm184_vm0, %v850_v18, %v818_v11  ;;  %v2225_v11 = vld [vmem:[%s3117_s13 + $0x8c] ss:$16 sps:$4 sm:$0xff]   ;;  %v2228_v18 = vld [vmem:[%s3117_s13 + $0x64] ss:$16 sps:$4 sm:$0xff]  }
 0x53a   :  { %v842_v24 = vpop.xlane.xlu0 %841 }
 0x53b   :  { %v859_v27 = vsel %vm857_vm2, %v854_v23, %v842_v24  ;;  %v2231_v23 = vld [vmem:[%s3117_s13 + $0x6c] ss:$16 sps:$4 sm:$0xff]   ;;  %v2234_v24 = vld [vmem:[%s3117_s13 + $0x44] ss:$16 sps:$4 sm:$0xff]  }
 0x53c   :  { %2308 = vrcp.f32 %v859_v27  ;;  %v2232_v27 = vld [vmem:[%s3117_s13 + $0x40] ss:$16 sps:$4 sm:$0xff]  }
 0x53d   :  { %2310 = vrcp.f32 %v860_v26  ;;  %v2307_v36 = vpop.eup %2306  ;;  %v2237_v26 = vld [vmem:[%s3117_s13 + $0x4c] ss:$16 sps:$4 sm:$0xff]  }
 0x53e   :  { %v848_v32 = vpop.xlane.xlu0 %847  ;;  %v917_v40 = vmul.f32 %v2307_v36, %v902_v34  ;;  %v2246_v34 = vld [vmem:[%s3117_s13 + $0x4] ss:$16 sps:$4 sm:$0xff]   ;;  %v2244_v36 = vld [vmem:[%s3117_s13] ss:$16 sps:$4 sm:$0xff]  }
 0x53f   :  { %v861_v33 = vsel %vm857_vm2, %v856_v31, %v848_v32  ;;  %v2243_v31 = vld [vmem:[%s3117_s13 + $0x2c] ss:$16 sps:$4 sm:$0xff]   ;;  %v2238_v32 = vld [vmem:[%s3117_s13 + $0x20] ss:$16 sps:$4 sm:$0xff]  }
 0x540   :  { %2312 = vrcp.f32 %v861_v33  ;;  %v2241_v33 = vld [vmem:[%s3117_s13 + $0x28] ss:$16 sps:$4 sm:$0xff]  }
 0x549   :  { %v2309_v37 = vpop.eup %2308 }
 0x54a   :  { %v918_v41 = vmul.f32 %v2309_v37, %v905_v39  ;;  %v2311_v21 = vpop.eup %2310  ;;  %v2247_v37 = vld [vmem:[%s3117_s13 + $0x8] ss:$16 sps:$4 sm:$0xff]  }
 0x54b   :  { %v919_v43 = vmul.f32 %v2311_v21, %v2116_v29  ;;  %v2235_v29 = vld [vmem:[%s3117_s13 + $0x48] ss:$16 sps:$4 sm:$0xff]  }
 0x54c   :  { %v921_v13 = vpack.c.bf16 %v918_v41, %v917_v40 }
 0x54d   :  { %v2313_v42 = vpop.eup %2312 }
 0x54e   :  { %2134 = vmatprep.mubr.bf16.mxu1 %v921_v13  ;;  %v920_v44 = vmul.f32 %v2313_v42, %v2117_v35  ;;  %v2249_v35 = vld [vmem:[%s3117_s13 + $0xc] ss:$16 sps:$4 sm:$0xff]  }
 0x550   :  { %v922_v45 = vpack.c.bf16 %v920_v44, %v919_v43 }
 0x552   :  { %2135 = vmatmul.mubr.bf16.vlgmr.msra.gmra.mxu1 %v922_v45 }
 0x553   :  { %1367 = vmatprep.mubr.bf16.mxu1 %v2362_v0  ;;  %1336 = vmatpush1.bf16.msra.mxu1 %v2205_v12 }
 0x554   :  { %1337 = vmatprep.subr.bf16.mxu1 %v2213_v2  ;;  %v2250_v2 = vld [vmem:[%s3120_s14 + $0x78] sm:$0xff]  }
 0x557   :  { %1338 = vmatpush1.bf16.msra.mxu1 %v2211_v4  ;;  %v2252_v4 = vld [vmem:[%s3120_s14 + $0x70] sm:$0xff]  }
 0x558   :  { %1339 = vmatprep.subr.bf16.mxu1 %v2219_v6  ;;  %v2254_v6 = vld [vmem:[%s3120_s14 + $0x68] sm:$0xff]  }
 0x55b   :  { %1340 = vmatpush1.bf16.msra.mxu1 %v2217_v9  ;;  %v2256_v9 = vld [vmem:[%s3120_s14 + $0x60] sm:$0xff]  }
 0x55c   :  { %1341 = vmatprep.subr.bf16.mxu1 %v2225_v11  ;;  %v2258_v11 = vld [vmem:[%s3120_s14 + $0x58] sm:$0xff]  }
 0x55f   :  { %1342 = vmatpush1.bf16.msra.mxu1 %v2223_v16  ;;  %v2260_v16 = vld [vmem:[%s3120_s14 + $0x50] sm:$0xff]  }
 0x560   :  { %1343 = vmatprep.subr.bf16.mxu1 %v2231_v23  ;;  %v2264_v23 = vld [vmem:[%s3120_s14 + $0x40] sm:$0xff]  }
 0x563   :  { %1344 = vmatpush1.bf16.msra.mxu1 %v2229_v22  ;;  %v2263_v22 = vld [vmem:[%s3120_s14 + $0x8] sm:$0xff]  }
 0x564   :  { %1345 = vmatprep.subr.bf16.mxu1 %v2237_v26 }
 0x567   :  { %1346 = vmatpush1.bf16.msra.mxu1 %v2235_v29 }
 0x568   :  { %1347 = vmatprep.subr.bf16.mxu1 %v2243_v31 }
 0x56b   :  { %1348 = vmatpush1.bf16.msra.mxu1 %v2241_v33 }
 0x56c   :  { %1349 = vmatprep.subr.bf16.mxu1 %v2249_v35 }
 0x56f   :  { %1350 = vmatpush1.bf16.msra.mxu1 %v2247_v37 }
 0x612   :  { %v2136_v51 = vpop.f32.mrf.mxu1 }
 0x613   :  { %v1038_v53 = vadd.f32 %v2136_v51, %v2570_v55 }
 0x614   :  { %v1021_v52 = vpop.f32.mrf.mxu1 }
 0x615   :  { %v1036_v14 = vadd.f32 %v1021_v52, %v2559_v38  ;;  %v2834_v57 = vadd.f32 %v1045_v8, %v1038_v53  ;;  %v1083_v52 = vrot.slane %v1079_v49, %v2553_v28 }
 0x616   :  { %v2137_v20 = vpop.f32.mrf.mxu1 }
 0x617   :  { %v2832_v54 = vadd.f32 %v1045_v8, %v1036_v14  ;;  %v1039_v58 = vadd.f32 %v2137_v20, %v2574_v62  ;;  %v1052_v38 = vmul.f32 %v2834_v57, %v2834_v57 }
 0x618   :  { %v1024_v56 = vpop.f32.mrf.mxu1 }
 0x619   :  { %v1037_v59 = vadd.f32 %v1024_v56, %v2566_v48  ;;  %v1050_v60 = vmul.f32 %v2832_v54, %v2832_v54  ;;  %v2842_v55 = vadd.f32 %v1045_v8, %v1039_v58  ;;  %v2210_v48 = vld [vmem:[%s3117_s13 + $0xc4] ss:$16 sps:$4 sm:$0xff]  }
 0x61a   :  { %1284 = vmatprep.subr.bf16.mxu0 %v2210_v48 }
 0x61b   :  { %v2840_v61 = vadd.f32 %v1045_v8, %v1037_v59  ;;  %1054 = vadd.xlane.f32.xlu1 %v1050_v60  ;;  %v1053_v62 = vmul.f32 %v2842_v55, %v2842_v55  ;;  %1285 = vmatpush1.bf16.msra.mxu0 %v2208_v3  ;;  %v2251_v3 = vld [vmem:[%s3120_s14 + $0x38] sm:$0xff]  }
 0x61c   :  { %1286 = vmatprep.subr.bf16.mxu0 %v2216_v5  ;;  %v2253_v5 = vld [vmem:[%s3120_s14 + $0x30] sm:$0xff]  }
 0x61d   :  { %v1051_v1 = vmul.f32 %v2840_v61, %v2840_v61 }
 0x61f   :  { %1058 = vadd.xlane.f32.xlu1 %v1052_v38  ;;  %1056 = vadd.xlane.f32.xlu0 %v1051_v1 }
 0x620   :  { %1287 = vmatpush1.bf16.msra.mxu0 %v2214_v7  ;;  %v2255_v7 = vld [vmem:[%s3120_s14 + $0x28] sm:$0xff]  }
 0x621   :  { %1288 = vmatprep.subr.bf16.mxu0 %v2222_v10  ;;  %v2257_v10 = vld [vmem:[%s3120_s14 + $0x20] sm:$0xff]  }
 0x623   :  { %1060 = vadd.xlane.f32.xlu0 %v1053_v62 }
 0x624   :  { %1289 = vmatpush1.bf16.msra.mxu0 %v2220_v15  ;;  %v2259_v15 = vld [vmem:[%s3120_s14 + $0x18] sm:$0xff]  }
 0x625   :  { %1290 = vmatprep.subr.bf16.mxu0 %v2228_v18  ;;  %v2262_v18 = vld [vmem:[%s3120_s14 + $0x48] sm:$0xff]  }
 0x628   :  { %1291 = vmatpush1.bf16.msra.mxu0 %v2226_v17  ;;  %v2261_v17 = vld [vmem:[%s3120_s14 + $0x10] sm:$0xff]  }
 0x629   :  { %1292 = vmatprep.subr.bf16.mxu0 %v2234_v24  ;;  %v2265_v24 = vld [vmem:[%s3120_s14] sm:$0xff]  }
 0x62c   :  { %1293 = vmatpush1.bf16.msra.mxu0 %v2232_v27 }
 0x62d   :  { %1294 = vmatprep.subr.bf16.mxu0 %v2240_v30 }
 0x630   :  { %1295 = vmatpush1.bf16.msra.mxu0 %v2238_v32 }
 0x631   :  { %1296 = vmatprep.subr.bf16.mxu0 %v2246_v34 }
 0x634   :  { %1297 = vmatpush1.bf16.msra.mxu0 %v2244_v36 }
 0x635   :  { %2030 = vmatprep.subr.bf16.mxu0 %v2250_v2 }
 0x6a4   :  { %v1055_v39 = vpop.xlane.xlu1 %1054 }
 0x6a5   :  { %v1062_v40 = vmul.f32 0.0078125, %v1055_v39 }
 0x6a7   :  { %v1066_v41 = vadd.f32 1e-06, %v1062_v40 }
 0x6a8   :  { %v1059_v21 = vpop.xlane.xlu1 %1058  ;;  %v1057_v13 = vpop.xlane.xlu0 %1056 }
 0x6a9   :  { %v1063_v42 = vmul.f32 0.0078125, %v1057_v13  ;;  %2314 = vrsqrt.f32 %v1066_v41  ;;  %v1064_v43 = vmul.f32 0.0078125, %v1059_v21 }
 0x6ab   :  { %v1067_v44 = vadd.f32 1e-06, %v1063_v42  ;;  %v1068_v47 = vadd.f32 1e-06, %v1064_v43 }
 0x6ac   :  { %v1061_v45 = vpop.xlane.xlu0 %1060 }
 0x6ad   :  { %v1065_v46 = vmul.f32 0.0078125, %v1061_v45  ;;  %2316 = vrsqrt.f32 %v1067_v44 }
 0x6af   :  { %v1069_v12 = vadd.f32 1e-06, %v1065_v46 }
 0x6b1   :  { %2318 = vrsqrt.f32 %v1069_v12 }
 0x6b2   :  { %2320 = vrsqrt.f32 %v1068_v47 }
 0x6b6   :  { %v2315_v50 = vpop.eup %2314 }
 0x6b7   :  { %v1074_v51 = vmul.f32 %v2315_v50, %v2832_v54 }
 0x6b9   :  { %v1084_v20 = vmul.f32 %v1083_v52, %v1074_v51 }
 0x6ba   :  { %v2317_v53 = vpop.eup %2316 }
 0x6bb   :  { %v1075_v8 = vmul.f32 %v2317_v53, %v2840_v61 }
 0x6bd   :  { %v1085_v56 = vmul.f32 %v1083_v52, %v1075_v8 }
 0x6be   :  { %v2319_v14 = vpop.eup %2318 }
 0x6bf   :  { %v2321_v58 = vpop.eup %2320  ;;  %v1088_v59 = vpack.c.bf16 %v1085_v56, %v1084_v20  ;;  %v1077_v60 = vmul.f32 %v2319_v14, %v2842_v55 }
 0x6c0   :  { %v1076_v38 = vmul.f32 %v2321_v58, %v2834_v57 }
 0x6c1   :  { %1315 = vmatmul.mubr.bf16.vlgmr.msra.gmra.mxu0 %v1088_v59  ;;  %1368 = vmatmul.mubr.bf16.vlgmr.msra.gmra.mxu1 %v1088_v59  ;;  %v1087_v1 = vmul.f32 %v1083_v52, %v1077_v60 }
 0x6c2   :  { %1324 = vmatprep.mubr.bf16.mxu0 %v2362_v0  ;;  %1377 = vmatprep.mubr.bf16.mxu1 %v2362_v0  ;;  %v1086_v62 = vmul.f32 %v1083_v52, %v1076_v38 }
 0x6c3   :  { %2031 = vmatpush3.bf16.msra.mxu0 %v2251_v3 }
 0x6c4   :  { %v1089_v48 = vpack.c.bf16 %v1087_v1, %v1086_v62  ;;  %2032 = vmatprep.subr.bf16.mxu0 %v2252_v4 }
 0x6c7   :  { %2033 = vmatpush3.bf16.msra.mxu0 %v2253_v5 }
 0x6c8   :  { %2034 = vmatprep.subr.bf16.mxu0 %v2254_v6 }
 0x6c9   :  { %1325 = vmatmul.mubr.bf16.gmra.mxu0 %v1089_v48  ;;  %1378 = vmatmul.mubr.bf16.gmra.mxu1 %v1089_v48 }
 0x6ca   :  { %1826 = vmatprep.mubr.bf16.mxu1 %v2362_v0 }
 0x6cb   :  { %2035 = vmatpush3.bf16.msra.mxu0 %v2255_v7 }
 0x6cc   :  { %2036 = vmatprep.subr.bf16.mxu0 %v2256_v9 }
 0x6cf   :  { %2037 = vmatpush3.bf16.msra.mxu0 %v2257_v10 }
 0x6d0   :  { %2038 = vmatprep.subr.bf16.mxu0 %v2258_v11 }
 0x6d3   :  { %2039 = vmatpush3.bf16.msra.mxu0 %v2259_v15 }
 0x6d4   :  { %2040 = vmatprep.subr.bf16.mxu0 %v2260_v16 }
 0x6d7   :  { %2041 = vmatpush3.bf16.msra.mxu0 %v2261_v17 }
 0x6d8   :  { %2042 = vmatprep.subr.bf16.mxu0 %v2262_v18 }
 0x6db   :  { %2043 = vmatpush3.bf16.msra.mxu0 %v2263_v22 }
 0x6dc   :  { %2044 = vmatprep.subr.bf16.mxu0 %v2264_v23 }
 0x6df   :  { %2045 = vmatpush3.bf16.msra.mxu0 %v2265_v24 }
 0x781   :  { %v1316_v26 = vpop.f32.mrf.mxu0  ;;  %v1369_v47 = vpop.f32.mrf.mxu1 }
 0x782   :  { %v1941_v27 = vmul.f32 -1.442695, %v1316_v26 }
 0x783   :  { %v1318_v29 = vpop.f32.mrf.mxu0  ;;  %v1371_v51 = vpop.f32.mrf.mxu1 }
 0x784   :  { %2322 = vpow2.f32 %v1941_v27  ;;  %v1942_v30 = vmul.f32 -1.442695, %v1318_v29 }
 0x785   :  { %v1320_v31 = vpop.f32.mrf.mxu0  ;;  %v1373_v20 = vpop.f32.mrf.mxu1 }
 0x786   :  { %2324 = vpow2.f32 %v1942_v30  ;;  %v1943_v32 = vmul.f32 -1.442695, %v1320_v31 }
 0x787   :  { %v1322_v33 = vpop.f32.mrf.mxu0  ;;  %v1375_v60 = vpop.f32.mrf.mxu1 }
 0x788   :  { %2326 = vpow2.f32 %v1943_v32  ;;  %v1944_v34 = vmul.f32 -1.442695, %v1322_v33 }
 0x789   :  { %v2993_v35 = vpop.f32.mrf.mxu0  ;;  %v1379_v48 = vpop.f32.mrf.mxu1 }
 0x78a   :  { %2328 = vpow2.f32 %v1944_v34  ;;  %v1945_v36 = vmul.f32 -1.442695, %v2993_v35 }
 0x78b   :  { %v1328_v37 = vpop.f32.mrf.mxu0  ;;  %v1381_v9 = vpop.f32.mrf.mxu1 }
 0x78c   :  { %2330 = vpow2.f32 %v1945_v36  ;;  %v1946_v39 = vmul.f32 -1.442695, %v1328_v37 }
 0x78d   :  { %v1330_v40 = vpop.f32.mrf.mxu0  ;;  %v1383_v24 = vpop.f32.mrf.mxu1 }
 0x78e   :  { %2332 = vpow2.f32 %v1946_v39  ;;  %v1947_v41 = vmul.f32 -1.442695, %v1330_v40 }
 0x78f   :  { %v1332_v21 = vpop.f32.mrf.mxu0 }
 0x790   :  { %2334 = vpow2.f32 %v1947_v41  ;;  %v1948_v13 = vmul.f32 -1.442695, %v1332_v21 }
 0x791   :  { %v2323_v42 = vpop.eup %2322 }
 0x792   :  { %2336 = vpow2.f32 %v1948_v13  ;;  %v1412_v44 = vadd.f32 1.0, %v2323_v42 }
 0x793   :  { %v2325_v43 = vpop.eup %2324 }
 0x794   :  { %v1413_v45 = vadd.f32 1.0, %v2325_v43 }
 0x795   :  { %v2327_v46 = vpop.eup %2326 }
 0x796   :  { %2338 = vrcp.f32 %v1413_v45  ;;  %v1414_v12 = vadd.f32 1.0, %v2327_v46 }
 0x797   :  { %v2329_v19 = vpop.eup %2328  ;;  %2340 = vrcp.f32 %v1412_v44 }
 0x798   :  { %2342 = vrcp.f32 %v1414_v12  ;;  %v1415_v49 = vadd.f32 1.0, %v2329_v19 }
 0x799   :  { %v2331_v50 = vpop.eup %2330 }
 0x79a   :  { %2344 = vrcp.f32 %v1415_v49  ;;  %v1416_v53 = vadd.f32 1.0, %v2331_v50 }
 0x79b   :  { %v2333_v52 = vpop.eup %2332 }
 0x79c   :  { %v1417_v8 = vadd.f32 1.0, %v2333_v52 }
 0x79d   :  { %v2335_v14 = vpop.eup %2334 }
 0x79e   :  { %2346 = vrcp.f32 %v1417_v8  ;;  %v1418_v56 = vadd.f32 1.0, %v2335_v14 }
 0x79f   :  { %v2337_v58 = vpop.eup %2336  ;;  %2348 = vrcp.f32 %v1416_v53 }
 0x7a0   :  { %2350 = vrcp.f32 %v1418_v56  ;;  %v1419_v59 = vadd.f32 1.0, %v2337_v58  ;;  %v2272_v58 = vld [vmem:[%s3121_s16 + $0x50] ss:$8 sps:$4 sm:$0xff]  }
 0x7a2   :  { %2352 = vrcp.f32 %v1419_v59  ;;  %v2277_v59 = vld [vmem:[%s3121_s16 + $0x44] ss:$8 sps:$4 sm:$0xff]  }
 0x7a3   :  { %v2339_v38 = vpop.eup %2338 }
 0x7a4   :  { %v2341_v1 = vpop.eup %2340  ;;  %v1437_v2 = vmul.f32 %v2339_v38, %v1318_v29  ;;  %v2280_v38 = vld [vmem:[%s3121_s16 + $0x34] ss:$8 sps:$4 sm:$0xff]  }
 0x7a5   :  { %v2343_v62 = vpop.eup %2342  ;;  %v1436_v5 = vmul.f32 %v2341_v1, %v1316_v26  ;;  %v2278_v1 = vld [vmem:[%s3121_s16 + $0x30] ss:$8 sps:$4 sm:$0xff]  }
 0x7a6   :  { %v1438_v3 = vmul.f32 %v2343_v62, %v1320_v31  ;;  %v1445_v10 = vmul.f32 %v1437_v2, %v1371_v51  ;;  %v2283_v62 = vld [vmem:[%s3121_s16 + $0x24] ss:$8 sps:$4 sm:$0xff]   ;;  %v2286_v2 = vld [vmem:[%s3121_s16 + $0x14] ss:$8 sps:$4 sm:$0xff]  }
 0x7a7   :  { %v2345_v4 = vpop.eup %2344  ;;  %v1444_v16 = vmul.f32 %v1436_v5, %v1369_v47  ;;  %v2289_v5 = vld [vmem:[%s3121_s16 + $0x4] ss:$8 sps:$4 sm:$0xff]  }
 0x7a8   :  { %v1439_v6 = vmul.f32 %v2345_v4, %v1322_v33  ;;  %v1446_v7 = vmul.f32 %v1438_v3, %v1373_v20  ;;  %v1385_v33 = vpop.f32.mrf.mxu1  ;;  %v2284_v3 = vld [vmem:[%s3121_s16 + $0x10] ss:$8 sps:$4 sm:$0xff]   ;;  %v2287_v4 = vld [vmem:[%s3121_s16] ss:$8 sps:$4 sm:$0xff]  }
 0x7aa   :  { %v1447_v11 = vmul.f32 %v1439_v6, %v1375_v60  ;;  %v1452_v23 = vpack.c.bf16 %v1446_v7, %v1444_v16  ;;  %v2275_v60 = vld [vmem:[%s3121_s16 + $0x40] ss:$8 sps:$4 sm:$0xff]  }
 0x7ab   :  { %v2347_v15 = vpop.eup %2346 }
 0x7ac   :  { %v2349_v17 = vpop.eup %2348  ;;  %v1453_v18 = vpack.c.bf16 %v1447_v11, %v1445_v10  ;;  %v1441_v27 = vmul.f32 %v2347_v15, %v1328_v37  ;;  %v2266_v37 = vld [vmem:[%s3121_s16 + $0x70] ss:$8 sps:$4 sm:$0xff]  }
 0x7ad   :  { %v2351_v22 = vpop.eup %2350  ;;  %v1440_v29 = vmul.f32 %v2349_v17, %v2993_v35 }
 0x7ae   :  { %v1442_v30 = vmul.f32 %v2351_v22, %v1330_v40  ;;  %1616 = vmatprep.mubr.bf16.mxu0 %v1453_v18  ;;  %v1449_v34 = vmul.f32 %v1441_v27, %v1381_v9  ;;  %v2268_v40 = vld [vmem:[%s3121_s16 + $0x74] ss:$8 sps:$4 sm:$0xff]  }
 0x7af   :  { %v2353_v32 = vpop.eup %2352  ;;  %1617 = vmatmul.mubr.bf16.vlgmr.msra.gmra.mxu0 %v1452_v23  ;;  %v1448_v39 = vmul.f32 %v1440_v29, %v1379_v48  ;;  %1794 = vmatprep.subr.bf16.mxu1 %v2268_v40  ;;  %v2281_v48 = vld [vmem:[%s3121_s16 + $0x20] ss:$8 sps:$4 sm:$0xff]  }
 0x7b0   :  { %v1443_v26 = vmul.f32 %v2353_v32, %v1332_v21  ;;  %v1450_v31 = vmul.f32 %v1442_v30, %v1383_v24  ;;  %1795 = vmatpush1.bf16.msra.mxu1 %v2266_v37  ;;  %v1665_v24 = vld [vmem:[%s3122_s15] sm:$0x1] }
 0x7b1   :  { %v1666_v30 = vunpack.c.l.bf16 %v1665_v24 }
 0x7b2   :  { %v1451_v36 = vmul.f32 %v1443_v26, %v1385_v33  ;;  %v1454_v13 = vpack.c.bf16 %v1450_v31, %v1448_v39 }
 0x7b3   :  { %v1670_v26 = vrot.slane %v1666_v30, %v2553_v28 }
 0x7b4   :  { %v1455_v41 = vpack.c.bf16 %v1451_v36, %v1449_v34 }
 0x7b6   :  { %1624 = vmatprep.mubr.bf16.mxu0 %v1455_v41 }
 0x7b7   :  { %1625 = vmatmul.mubr.bf16.gmra.mxu0 %v1454_v13 }
 0x86f   :  { %v2046_v35 = vpop.f32.mrf.mxu0 }
 0x871   :  { %v2047_v21 = vpop.f32.mrf.mxu0 }
 0x872   :  { %v2048_v42 = vadd.f32 %v2047_v21, %v2046_v35 }
 0x873   :  { %v2049_v43 = vpop.f32.mrf.mxu0 }
 0x874   :  { %v3004_v44 = vadd.f32 %v2048_v42, %v2832_v54 }
 0x875   :  { %v2050_v45 = vpop.f32.mrf.mxu0 }
 0x876   :  { %v2051_v46 = vadd.f32 %v2050_v45, %v2049_v43  ;;  %v1637_v47 = vmul.f32 %v3004_v44, %v3004_v44  ;;  %v1693_v43 = vld [vmem:[%s3123_s17] sm:$0x3] }
 0x877   :  { %v2052_v12 = vpop.f32.mrf.mxu0 }
 0x878   :  { %v3009_v19 = vadd.f32 %v2051_v46, %v2840_v61  ;;  %1641 = vadd.xlane.f32.xlu1 %v1637_v47  ;;  %v2271_v61 = vld [vmem:[%s3121_s16 + $0x64] ss:$8 sps:$4 sm:$0xff]  }
 0x879   :  { %v2053_v49 = vpop.f32.mrf.mxu0  ;;  %1796 = vmatprep.subr.bf16.mxu1 %v2271_v61 }
 0x87a   :  { %v2054_v50 = vadd.f32 %v2053_v49, %v2052_v12  ;;  %v1638_v51 = vmul.f32 %v3009_v19, %v3009_v19 }
 0x87b   :  { %v2055_v52 = vpop.f32.mrf.mxu0 }
 0x87c   :  { %v3014_v53 = vadd.f32 %v2054_v50, %v2834_v57  ;;  %1643 = vadd.xlane.f32.xlu0 %v1638_v51  ;;  %v2269_v57 = vld [vmem:[%s3121_s16 + $0x60] ss:$8 sps:$4 sm:$0xff]  }
 0x87d   :  { %v2056_v54 = vpop.f32.mrf.mxu0  ;;  %1797 = vmatpush1.bf16.msra.mxu1 %v2269_v57 }
 0x87e   :  { %v2057_v8 = vadd.f32 %v2056_v54, %v2055_v52  ;;  %v1639_v14 = vmul.f32 %v3014_v53, %v3014_v53 }
 0x880   :  { %v3019_v20 = vadd.f32 %v2057_v8, %v2842_v55  ;;  %1645 = vadd.xlane.f32.xlu1 %v1639_v14  ;;  %v2274_v55 = vld [vmem:[%s3121_s16 + $0x54] ss:$8 sps:$4 sm:$0xff]  }
 0x881   :  { %1798 = vmatprep.subr.bf16.mxu1 %v2274_v55 }
 0x882   :  { %v1640_v56 = vmul.f32 %v3019_v20, %v3019_v20  ;;  %1799 = vmatpush1.bf16.msra.mxu1 %v2272_v58 }
 0x883   :  { %1800 = vmatprep.subr.bf16.mxu1 %v2277_v59 }
 0x884   :  { %1647 = vadd.xlane.f32.xlu0 %v1640_v56 }
 0x886   :  { %1801 = vmatpush1.bf16.msra.mxu1 %v2275_v60 }
 0x887   :  { %1802 = vmatprep.subr.bf16.mxu1 %v2280_v38 }
 0x88a   :  { %1803 = vmatpush1.bf16.msra.mxu1 %v2278_v1 }
 0x88b   :  { %1804 = vmatprep.subr.bf16.mxu1 %v2283_v62 }
 0x88e   :  { %1805 = vmatpush1.bf16.msra.mxu1 %v2281_v48 }
 0x88f   :  { %1806 = vmatprep.subr.bf16.mxu1 %v2286_v2 }
 0x892   :  { %1807 = vmatpush1.bf16.msra.mxu1 %v2284_v3 }
 0x893   :  { %1808 = vmatprep.subr.bf16.mxu1 %v2289_v5 }
 0x896   :  { %1809 = vmatpush1.bf16.msra.mxu1 %v2287_v4 }
 0x901   :  { %v1642_v6 = vpop.xlane.xlu1 %1641 }
 0x902   :  { %v1649_v7 = vmul.f32 0.0078125, %v1642_v6 }
 0x904   :  { %v1653_v9 = vadd.f32 1e-06, %v1649_v7 }
 0x905   :  { %v1644_v10 = vpop.xlane.xlu0 %1643 }
 0x906   :  { %2354 = vrsqrt.f32 %v1653_v9  ;;  %v1650_v11 = vmul.f32 0.0078125, %v1644_v10 }
 0x908   :  { %v1654_v15 = vadd.f32 1e-06, %v1650_v11 }
 0x909   :  { %v1646_v16 = vpop.xlane.xlu1 %1645 }
 0x90a   :  { %2356 = vrsqrt.f32 %v1654_v15  ;;  %v1651_v17 = vmul.f32 0.0078125, %v1646_v16 }
 0x90c   :  { %v1655_v18 = vadd.f32 1e-06, %v1651_v17 }
 0x90d   :  { %v1648_v22 = vpop.xlane.xlu0 %1647 }
 0x90e   :  { %2358 = vrsqrt.f32 %v1655_v18  ;;  %v1652_v23 = vmul.f32 0.0078125, %v1648_v22 }
 0x910   :  { %v1656_v27 = vadd.f32 1e-06, %v1652_v23 }
 0x912   :  { %2360 = vrsqrt.f32 %v1656_v27 }
 0x913   :  { %v2355_v32 = vpop.eup %2354 }
 0x914   :  { %v1661_v29 = vmul.f32 %v2355_v32, %v3004_v44  ;;  %v1694_v44 = vunpack.c.l.bf16 %v1693_v43 }
 0x916   :  { %v1671_v34 = vmul.f32 %v1670_v26, %v1661_v29  ;;  %v1699_v45 = vrot.slane %v1694_v44, %v2553_v28  ;;  %v1703_v46 = vrot.slane %v1694_v44, %v362_v63 }
 0x917   :  { %v2357_v31 = vpop.eup %2356 }
 0x918   :  { %v1662_v33 = vmul.f32 %v2357_v31, %v3009_v19  ;;  %v1709_v47 = vrot.slane %v1699_v45, %v2553_v28 }
 0x91a   :  { %v1672_v36 = vmul.f32 %v1670_v26, %v1662_v33 }
 0x91b   :  { %v2359_v39 = vpop.eup %2358 }
 0x91c   :  { %v1675_v41 = vpack.c.bf16 %v1672_v36, %v1671_v34  ;;  %v1663_v13 = vmul.f32 %v2359_v39, %v3014_v53 }
 0x91e   :  { %1827 = vmatmul.mubr.bf16.vlgmr.msra.gmra.mxu1 %v1675_v41  ;;  %v1673_v35 = vmul.f32 %v1670_v26, %v1663_v13 }
 0x91f   :  { %v2361_v37 = vpop.eup %2360  ;;  %1836 = vmatprep.mubr.bf16.mxu1 %v2362_v0  ;;  %v1713_v0 = vrot.slane %v1703_v46, %v2553_v28 }
 0x920   :  { %v1664_v40 = vmul.f32 %v2361_v37, %v3019_v20 }
 0x922   :  { %v1674_v21 = vmul.f32 %v1670_v26, %v1664_v40 }
 0x924   :  { %v1676_v42 = vpack.c.bf16 %v1674_v21, %v1673_v35 }
 0x926   :  { %1837 = vmatmul.mubr.bf16.gmra.mxu1 %v1676_v42 }
 0x9de   :  { %v1828_v12 = vpop.f32.mrf.mxu1 }
 0x9df   :  { %v1829_v19 = vadd.f32 %v1828_v12, %v1709_v47 }
 0x9e0   :  { %v1830_v49 = vpop.f32.mrf.mxu1 }
 0x9e1   :  { %1847 = vst [vmem:[%s3124_s18] sm:$0xff] %v1829_v19  ;;  %v1831_v50 = vadd.f32 %v1830_v49, %v1713_v0 }
 0x9e2   :  { %v1832_v51 = vpop.f32.mrf.mxu1 }
 0x9e3   :  { %1848 = vst [vmem:[%s3124_s18 + $0x8] sm:$0xff] %v1831_v50  ;;  %v1833_v52 = vadd.f32 %v1832_v51, %v1709_v47 }
 0x9e4   :  { %v1834_v25 = vpop.f32.mrf.mxu1 }
 0x9e5   :  { %1849 = vst [vmem:[%s3124_s18 + $0x10] sm:$0xff] %v1833_v52  ;;  %v1835_v28 = vadd.f32 %v1834_v25, %v1713_v0 }
 0x9e6   :  { %v1838_v63 = vpop.f32.mrf.mxu1 }
 0x9e7   :  { %1850 = vst [vmem:[%s3124_s18 + $0x18] sm:$0xff] %v1835_v28  ;;  %v1839_v53 = vadd.f32 %v1838_v63, %v1709_v47 }
 0x9e8   :  { %v1840_v54 = vpop.f32.mrf.mxu1 }
 0x9e9   :  { %1851 = vst [vmem:[%s3124_s18 + $0x20] sm:$0xff] %v1839_v53  ;;  %v1841_v8 = vadd.f32 %v1840_v54, %v1713_v0 }
 0x9ea   :  { %v1842_v14 = vpop.f32.mrf.mxu1 }
 0x9eb   :  { %1852 = vst [vmem:[%s3124_s18 + $0x28] sm:$0xff] %v1841_v8  ;;  %v1843_v20 = vadd.f32 %v1842_v14, %v1709_v47 }
 0x9ec   :  { %v1844_v61 = vpop.f32.mrf.mxu1 }
 0x9ed   :  { %1853 = vst [vmem:[%s3124_s18 + $0x30] sm:$0xff] %v1843_v20  ;;  %v1845_v56 = vadd.f32 %v1844_v61, %v1713_v0 }
 0x9ef   :  { %1854 = vst [vmem:[%s3124_s18 + $0x38] sm:$0xff] %v1845_v56 }

</bundles_post_ra>
